<compile_context>
chip_gen: v5e
topology: v5e:2x2
jax: 0.10.0
libtpu: 0.0.40
codegen_flags: <defaults>
</compile_context>

<pallas_src>
import jax
import jax.numpy as jnp
from jax import lax
from jax.experimental import pallas as pl
from jax.experimental.pallas import tpu as pltpu


# ----------------------------- Pallas kernels ------------------------------

def _conv_pool_kernel(p0_ref, p1_ref, p2_ref, p3_ref, w_ref, b_ref, o_ref):
    """Fused conv (matmul on pool-offset patch matrices) + 2x2 maxpool + bias + ReLU.

    p*_ref: (K, B*M) bf16 patches for pool offsets (0,0),(0,1),(1,0),(1,1)
    w_ref : (O, K)   bf16 conv weight flattened over (C, kh, kw) (PyTorch OIHW order)
    b_ref : (O, 1)   f32 bias column (broadcast along lanes)
    o_ref : (O, B*M) pooled activations, batch*spatial lane-dense
    """
    w = w_ref[...]
    acc = jnp.dot(w, p0_ref[...], preferred_element_type=jnp.float32)
    for p_ref in (p1_ref, p2_ref, p3_ref):
        acc = jnp.maximum(acc, jnp.dot(w, p_ref[...], preferred_element_type=jnp.float32))
    # bias + ReLU once, after the pool max (exact: bias shared across offsets).
    o_ref[...] = jnp.maximum(acc + b_ref[...], 0.0).astype(o_ref.dtype)


def _conv_pool_mlp_kernel(p0_ref, p1_ref, p2_ref, p3_ref, wc_ref, bc_ref,
                          w1_ref, b1_ref, w2_ref, b2_ref, w3_ref, b3_ref,
                          o_ref, xflat_ref):
    """conv2 + bias + ReLU + 2x2 maxpool + flatten + fc1/ReLU + fc2/ReLU + fc3."""
    wc = wc_ref[...]
    acc = jnp.dot(wc, p0_ref[...], preferred_element_type=jnp.float32)
    for p_ref in (p1_ref, p2_ref, p3_ref):
        acc = jnp.maximum(acc, jnp.dot(wc, p_ref[...], preferred_element_type=jnp.float32))
    act = jnp.maximum(acc + bc_ref[...], 0.0)      # (O2, B*M2) f32, cols ordered (b, i, j)

    B = xflat_ref.shape[0]
    O2 = act.shape[0]
    M2 = act.shape[1] // B
    # Flatten into (B, O2*M2) in PyTorch .view(-1, 400) order (c, i, j) using small
    # static ref stores into a lane-dense VMEM scratch (avoids an unaligned in-kernel
    # reshape across the lane boundary).
    for b in range(B):
        for c in range(O2):
            xflat_ref[b:b + 1, c * M2:(c + 1) * M2] = act[c:c + 1, b * M2:(b + 1) * M2]
    x = xflat_ref[...]                             # (B, 400) f32, fc1-ready

    h = jnp.maximum(
        jnp.dot(x, w1_ref[...], preferred_element_type=jnp.float32) + b1_ref[...], 0.0)
    h = jnp.maximum(
        jnp.dot(h, w2_ref[...], preferred_element_type=jnp.float32) + b2_ref[...], 0.0)
    o_ref[...] = (jnp.dot(h, w3_ref[...], preferred_element_type=jnp.float32)
                  + b3_ref[...]).astype(o_ref.dtype)


# ------------------------------ JAX-side glue -------------------------------

def _pool_offset_patches(x_nchw, k, out_dtype):
    """im2col + 2x2-pool-offset split.

    Returns 4 (C*k*k, B*Hp*Wp) matrices (pool offsets (0,0),(0,1),(1,0),(1,1)).
    Rows are in PyTorch OIHW flatten order (c, kh, kw); columns are ordered (b, i, j)
    with the batch merged into the lane dimension.
    """
    B, C, H, W = x_nchw.shape
    Ho, Wo = H - k + 1, W - k + 1
    Hp, Wp = Ho // 2, Wo // 2
    K = C * k * k
    # (B, K, Ho, Wo); feature ordering (c, kh, kw) matches the PyTorch OIHW flatten.
    p = lax.conv_general_dilated_patches(x_nchw, (k, k), (1, 1), "VALID")
    p = p.astype(out_dtype).transpose(1, 0, 2, 3)          # (K, B, Ho, Wo)
    ps = [p[:, :, pi::2, pj::2].reshape(K, B * Hp * Wp)
          for pi in (0, 1) for pj in (0, 1)]
    return ps, (Hp, Wp)


def _conv1_stage(x, w_mat, b_col):
    """conv1 + bias + ReLU + 2x2 maxpool.  x: (B, 3, 32, 32) -> (B, 6, 14, 14)."""
    B = x.shape[0]
    O, K = w_mat.shape
    ps, (Hp, Wp) = _pool_offset_patches(x, 5, w_mat.dtype)
    M = B * Hp * Wp
    out = pl.pallas_call(
        _conv_pool_kernel,
        out_shape=jax.ShapeDtypeStruct((O, M), jnp.bfloat16),
        grid=(1,),
        in_specs=[pl.BlockSpec((K, M), lambda i: (0, 0))] * 4
                 + [pl.BlockSpec((O, K), lambda i: (0, 0)),
                    pl.BlockSpec((O, 1), lambda i: (0, 0))],
        out_specs=pl.BlockSpec((O, M), lambda i: (0, 0)),
    )(*ps, w_mat, b_col)
    # Back to NCHW (tiny, fuses into the conv2 patch-extraction glue).
    return out.reshape(O, B, Hp, Wp).transpose(1, 0, 2, 3)


def _conv2_mlp_stage(a1, kp):
    """conv2 + bias + ReLU + pool + flatten + fc1/ReLU + fc2/ReLU + fc3, one kernel."""
    B = a1.shape[0]
    wc, bc = kp["conv2_w"], kp["conv2_b"]
    O2, K2 = wc.shape
    ps, (Hp, Wp) = _pool_offset_patches(a1, 5, wc.dtype)
    M2 = B * Hp * Wp
    D0, D1 = kp["fc1_w"].shape
    D2 = kp["fc2_w"].shape[1]
    D3 = kp["fc3_w"].shape[1]
    return pl.pallas_call(
        _conv_pool_mlp_kernel,
        out_shape=jax.ShapeDtypeStruct((B, D3), jnp.float32),
        grid=(1,),
        in_specs=[pl.BlockSpec((K2, M2), lambda i: (0, 0))] * 4
                 + [pl.BlockSpec((O2, K2), lambda i: (0, 0)),
                    pl.BlockSpec((O2, 1), lambda i: (0, 0)),
                    pl.BlockSpec((D0, D1), lambda i: (0, 0)),
                    pl.BlockSpec((1, D1), lambda i: (0, 0)),
                    pl.BlockSpec((D1, D2), lambda i: (0, 0)),
                    pl.BlockSpec((1, D2), lambda i: (0, 0)),
                    pl.BlockSpec((D2, D3), lambda i: (0, 0)),
                    pl.BlockSpec((1, D3), lambda i: (0, 0))],
        out_specs=pl.BlockSpec((B, D3), lambda i: (0, 0)),
        scratch_shapes=[pltpu.VMEM((B, D0), jnp.float32)],
    )(*ps, wc, bc,
      kp["fc1_w"], kp["fc1_b"], kp["fc2_w"], kp["fc2_b"], kp["fc3_w"], kp["fc3_b"])


def net_forward(kparams, x):
    a1 = _conv1_stage(x, kparams["conv1_w"], kparams["conv1_b"])   # (B, 6, 14, 14)
    return _conv2_mlp_stage(a1, kparams)                           # (B, 10)


def prepare_params(params):
    """One-time repack of PyTorch-layout params into kernel layouts (called OUTSIDE jit
    so no transposes / reshapes of parameters appear in the traced forward graph)."""
    f32, bf16 = jnp.float32, jnp.bfloat16
    return {
        "conv1_w": params["conv1_w"].reshape(6, -1).astype(bf16),    # (6, 75)
        "conv1_b": params["conv1_b"].reshape(-1, 1).astype(f32),     # (6, 1)
        "conv2_w": params["conv2_w"].reshape(16, -1).astype(bf16),   # (16, 150)
        "conv2_b": params["conv2_b"].reshape(-1, 1).astype(f32),     # (16, 1)
        "fc1_w": params["fc1_w"].T.astype(f32),                      # (400, 120)
        "fc1_b": params["fc1_b"].reshape(1, -1).astype(f32),
        "fc2_w": params["fc2_w"].T.astype(f32),                      # (120, 84)
        "fc2_b": params["fc2_b"].reshape(1, -1).astype(f32),
        "fc3_w": params["fc3_w"].T.astype(f32),                      # (84, 10)
        "fc3_b": params["fc3_b"].reshape(1, -1).astype(f32),
    }


# --------------------------- reference (pure JAX) ---------------------------

def reference_forward(params, x):
    def conv(x, w, b):
        y = lax.conv_general_dilated(
            x, w, (1, 1), "VALID", dimension_numbers=("NCHW", "OIHW", "NCHW"))
        return jax.nn.relu(y + b.reshape(1, -1, 1, 1))

    def pool(x):
        return lax.reduce_window(x, -jnp.inf, lax.max,
                                 (1, 1, 2, 2), (1, 1, 2, 2), "VALID")

    x = pool(conv(x, params["conv1_w"], params["conv1_b"]))
    x = pool(conv(x, params["conv2_w"], params["conv2_b"]))
    x = x.reshape(-1, 400)
    x = jax.nn.relu(x @ params["fc1_w"].T + params["fc1_b"])
    x = jax.nn.relu(x @ params["fc2_w"].T + params["fc2_b"])
    return x @ params["fc3_w"].T + params["fc3_b"]


# --------------------------------- params -----------------------------------

def init_params(key):
    ks = jax.random.split(key, 10)

    def uni(k, shape, fan_in):
        bound = 1.0 / jnp.sqrt(fan_in)
        return jax.random.uniform(k, shape, jnp.float32, -bound, bound)

    return {
        "conv1_w": uni(ks[0], (6, 3, 5, 5), 3 * 5 * 5),
        "conv1_b": uni(ks[1], (6,), 3 * 5 * 5),
        "conv2_w": uni(ks[2], (16, 6, 5, 5), 6 * 5 * 5),
        "conv2_b": uni(ks[3], (16,), 6 * 5 * 5),
        "fc1_w": uni(ks[4], (120, 400), 400),
        "fc1_b": uni(ks[5], (120,), 400),
        "fc2_w": uni(ks[6], (84, 120), 120),
        "fc2_b": uni(ks[7], (84,), 120),
        "fc3_w": uni(ks[8], (10, 84), 84),
        "fc3_b": uni(ks[9], (10,), 84),
    }


if __name__ == "__main__":
    key = jax.random.PRNGKey(0)
    pkey, xkey = jax.random.split(key)
    params = init_params(pkey)
    kparams = prepare_params(params)   # outside jit: layout/dtype repack is one-time
    # CIFAR-sized input required by the 16*5*5 flatten: (B=2, C=3, H=32, W=32), NCHW.
    x = jax.random.normal(xkey, (2, 3, 32, 32), jnp.float32)

    fwd = jax.jit(net_forward)
    out = jax.block_until_ready(fwd(kparams, x))
    ref = jax.block_until_ready(jax.jit(reference_forward)(params, x))

    assert out.shape == (2, 10), out.shape
    # bf16 conv-stage MXU operands (per perf guidance) give ~0.2-0.5% relative error per
    # conv layer vs the pure-f32 reference; tolerance sized deliberately for that.
    max_diff = float(jnp.max(jnp.abs(out - ref)))
    assert jnp.allclose(out, ref, atol=2e-2, rtol=2e-2), (
        "mismatch vs reference: max abs diff %e" % max_diff)
    print("KERNEL_OK")
</pallas_src>

<mosaic_0001>
module attributes {stable_mosaic.version = 11 : i64} {
  func.func @_conv_pool_kernel(%arg0: i32, %arg1: memref<75x392xbf16, #tpu.memory_space<vmem>>, %arg2: memref<75x392xbf16, #tpu.memory_space<vmem>>, %arg3: memref<75x392xbf16, #tpu.memory_space<vmem>>, %arg4: memref<75x392xbf16, #tpu.memory_space<vmem>>, %arg5: memref<6x75xbf16, #tpu.memory_space<vmem>>, %arg6: memref<6x1xf32, #tpu.memory_space<vmem>>, %arg7: memref<6x392xbf16, #tpu.memory_space<vmem>>) attributes {dimension_semantics = [#tpu.dimension_semantics<arbitrary>], iteration_bounds = array<i64: 1>, scalar_prefetch = 0 : i64, scratch_operands = 0 : i64, tpu.core_type = #tpu.core_type<tc>, window_params = [{pipeline_mode = #tpu.pipeline_mode<synchronous>, transform_indices = @transform_0, window_bounds = array<i64: 75, 392>}, {pipeline_mode = #tpu.pipeline_mode<synchronous>, transform_indices = @transform_1, window_bounds = array<i64: 75, 392>}, {pipeline_mode = #tpu.pipeline_mode<synchronous>, transform_indices = @transform_2, window_bounds = array<i64: 75, 392>}, {pipeline_mode = #tpu.pipeline_mode<synchronous>, transform_indices = @transform_3, window_bounds = array<i64: 75, 392>}, {pipeline_mode = #tpu.pipeline_mode<synchronous>, transform_indices = @transform_4, window_bounds = array<i64: 6, 75>}, {pipeline_mode = #tpu.pipeline_mode<synchronous>, transform_indices = @transform_5, window_bounds = array<i64: 6, 1>}, {pipeline_mode = #tpu.pipeline_mode<synchronous>, transform_indices = @transform_6, window_bounds = array<i64: 6, 392>}]} {
    %c0 = arith.constant 0 : index
    %c0_0 = arith.constant 0 : index
    %0 = vector.load %arg5[%c0, %c0_0] : memref<6x75xbf16, #tpu.memory_space<vmem>>, vector<6x75xbf16>
    %c0_1 = arith.constant 0 : index
    %c0_2 = arith.constant 0 : index
    %1 = vector.load %arg1[%c0_1, %c0_2] : memref<75x392xbf16, #tpu.memory_space<vmem>>, vector<75x392xbf16>
    %cst = arith.constant dense<0.000000e+00> : vector<6x392xf32>
    %2 = tpu.matmul %0, %1, %cst {dimension_numbers = #tpu.dot_dimension_numbers<[1], [0], [0], [1], [0, 0, 1, 1], [], []>} : vector<6x75xbf16>, vector<75x392xbf16>, vector<6x392xf32> -> vector<6x392xf32>
    %c0_3 = arith.constant 0 : index
    %c0_4 = arith.constant 0 : index
    %3 = vector.load %arg2[%c0_3, %c0_4] : memref<75x392xbf16, #tpu.memory_space<vmem>>, vector<75x392xbf16>
    %cst_5 = arith.constant dense<0.000000e+00> : vector<6x392xf32>
    %4 = tpu.matmul %0, %3, %cst_5 {dimension_numbers = #tpu.dot_dimension_numbers<[1], [0], [0], [1], [0, 0, 1, 1], [], []>} : vector<6x75xbf16>, vector<75x392xbf16>, vector<6x392xf32> -> vector<6x392xf32>
    %5 = arith.maximumf %2, %4 : vector<6x392xf32>
    %c0_6 = arith.constant 0 : index
    %c0_7 = arith.constant 0 : index
    %6 = vector.load %arg3[%c0_6, %c0_7] : memref<75x392xbf16, #tpu.memory_space<vmem>>, vector<75x392xbf16>
    %cst_8 = arith.constant dense<0.000000e+00> : vector<6x392xf32>
    %7 = tpu.matmul %0, %6, %cst_8 {dimension_numbers = #tpu.dot_dimension_numbers<[1], [0], [0], [1], [0, 0, 1, 1], [], []>} : vector<6x75xbf16>, vector<75x392xbf16>, vector<6x392xf32> -> vector<6x392xf32>
    %8 = arith.maximumf %5, %7 : vector<6x392xf32>
    %c0_9 = arith.constant 0 : index
    %c0_10 = arith.constant 0 : index
    %9 = vector.load %arg4[%c0_9, %c0_10] : memref<75x392xbf16, #tpu.memory_space<vmem>>, vector<75x392xbf16>
    %cst_11 = arith.constant dense<0.000000e+00> : vector<6x392xf32>
    %10 = tpu.matmul %0, %9, %cst_11 {dimension_numbers = #tpu.dot_dimension_numbers<[1], [0], [0], [1], [0, 0, 1, 1], [], []>} : vector<6x75xbf16>, vector<75x392xbf16>, vector<6x392xf32> -> vector<6x392xf32>
    %11 = arith.maximumf %8, %10 : vector<6x392xf32>
    %c0_12 = arith.constant 0 : index
    %c0_13 = arith.constant 0 : index
    %12 = vector.load %arg6[%c0_12, %c0_13] : memref<6x1xf32, #tpu.memory_space<vmem>>, vector<6x1xf32>
    %13 = vector.broadcast %12 : vector<6x1xf32> to vector<6x392xf32>
    %14 = arith.addf %11, %13 : vector<6x392xf32>
    %cst_14 = arith.constant 0.000000e+00 : f32
    %15 = vector.broadcast %cst_14 : f32 to vector<6x392xf32>
    %16 = arith.maximumf %14, %15 : vector<6x392xf32>
    %17 = arith.truncf %16 : vector<6x392xf32> to vector<6x392xbf16>
    %c0_15 = arith.constant 0 : index
    %c0_16 = arith.constant 0 : index
    %18 = vector.load %arg7[%c0_15, %c0_16] : memref<6x392xbf16, #tpu.memory_space<vmem>>, vector<6x392xbf16>
    tpu.vector_store %arg7[%c0_15, %c0_16], %17 {strides = array<i32>} : memref<6x392xbf16, #tpu.memory_space<vmem>>, vector<6x392xbf16>,
    return
  }
  func.func @transform_0(%arg0: i32) -> (i32, i32) {
    %c0_i32 = arith.constant 0 : i32
    %c0_i32_0 = arith.constant 0 : i32
    %c0_i32_1 = arith.constant 0 : i32
    return %c0_i32, %c0_i32_0 : i32, i32
  }
  func.func @transform_1(%arg0: i32) -> (i32, i32) {
    %c0_i32 = arith.constant 0 : i32
    %c0_i32_0 = arith.constant 0 : i32
    %c0_i32_1 = arith.constant 0 : i32
    return %c0_i32, %c0_i32_0 : i32, i32
  }
  func.func @transform_2(%arg0: i32) -> (i32, i32) {
    %c0_i32 = arith.constant 0 : i32
    %c0_i32_0 = arith.constant 0 : i32
    %c0_i32_1 = arith.constant 0 : i32
    return %c0_i32, %c0_i32_0 : i32, i32
  }
  func.func @transform_3(%arg0: i32) -> (i32, i32) {
    %c0_i32 = arith.constant 0 : i32
    %c0_i32_0 = arith.constant 0 : i32
    %c0_i32_1 = arith.constant 0 : i32
    return %c0_i32, %c0_i32_0 : i32, i32
  }
  func.func @transform_4(%arg0: i32) -> (i32, i32) {
    %c0_i32 = arith.constant 0 : i32
    %c0_i32_0 = arith.constant 0 : i32
    %c0_i32_1 = arith.constant 0 : i32
    return %c0_i32, %c0_i32_0 : i32, i32
  }
  func.func @transform_5(%arg0: i32) -> (i32, i32) {
    %c0_i32 = arith.constant 0 : i32
    %c0_i32_0 = arith.constant 0 : i32
    %c0_i32_1 = arith.constant 0 : i32
    return %c0_i32, %c0_i32_0 : i32, i32
  }
  func.func @transform_6(%arg0: i32) -> (i32, i32) {
    %c0_i32 = arith.constant 0 : i32
    %c0_i32_0 = arith.constant 0 : i32
    %c0_i32_1 = arith.constant 0 : i32
    return %c0_i32, %c0_i32_0 : i32, i32
  }
}

module attributes {stable_mosaic.version = 11 : i64} {
  func.func @_conv_pool_mlp_kernel(%arg0: i32, %arg1: memref<150x50xbf16, #tpu.memory_space<vmem>>, %arg2: memref<150x50xbf16, #tpu.memory_space<vmem>>, %arg3: memref<150x50xbf16, #tpu.memory_space<vmem>>, %arg4: memref<150x50xbf16, #tpu.memory_space<vmem>>, %arg5: memref<16x150xbf16, #tpu.memory_space<vmem>>, %arg6: memref<16x1xf32, #tpu.memory_space<vmem>>, %arg7: memref<400x120xf32, #tpu.memory_space<vmem>>, %arg8: memref<1x120xf32, #tpu.memory_space<vmem>>, %arg9: memref<120x84xf32, #tpu.memory_space<vmem>>, %arg10: memref<1x84xf32, #tpu.memory_space<vmem>>, %arg11: memref<84x10xf32, #tpu.memory_space<vmem>>, %arg12: memref<1x10xf32, #tpu.memory_space<vmem>>, %arg13: memref<2x10xf32, #tpu.memory_space<vmem>>, %arg14: memref<2x400xf32, #tpu.memory_space<vmem>>) attributes {dimension_semantics = [#tpu.dimension_semantics<arbitrary>], iteration_bounds = array<i64: 1>, scalar_prefetch = 0 : i64, scratch_operands = 1 : i64, tpu.core_type = #tpu.core_type<tc>, window_params = [{pipeline_mode = #tpu.pipeline_mode<synchronous>, transform_indices = @transform_0, window_bounds = array<i64: 150, 50>}, {pipeline_mode = #tpu.pipeline_mode<synchronous>, transform_indices = @transform_1, window_bounds = array<i64: 150, 50>}, {pipeline_mode = #tpu.pipeline_mode<synchronous>, transform_indices = @transform_2, window_bounds = array<i64: 150, 50>}, {pipeline_mode = #tpu.pipeline_mode<synchronous>, transform_indices = @transform_3, window_bounds = array<i64: 150, 50>}, {pipeline_mode = #tpu.pipeline_mode<synchronous>, transform_indices = @transform_4, window_bounds = array<i64: 16, 150>}, {pipeline_mode = #tpu.pipeline_mode<synchronous>, transform_indices = @transform_5, window_bounds = array<i64: 16, 1>}, {pipeline_mode = #tpu.pipeline_mode<synchronous>, transform_indices = @transform_6, window_bounds = array<i64: 400, 120>}, {pipeline_mode = #tpu.pipeline_mode<synchronous>, transform_indices = @transform_7, window_bounds = array<i64: 1, 120>}, {pipeline_mode = #tpu.pipeline_mode<synchronous>, transform_indices = @transform_8, window_bounds = array<i64: 120, 84>}, {pipeline_mode = #tpu.pipeline_mode<synchronous>, transform_indices = @transform_9, window_bounds = array<i64: 1, 84>}, {pipeline_mode = #tpu.pipeline_mode<synchronous>, transform_indices = @transform_10, window_bounds = array<i64: 84, 10>}, {pipeline_mode = #tpu.pipeline_mode<synchronous>, transform_indices = @transform_11, window_bounds = array<i64: 1, 10>}, {pipeline_mode = #tpu.pipeline_mode<synchronous>, transform_indices = @transform_12, window_bounds = array<i64: 2, 10>}]} {
    %c0 = arith.constant 0 : index
    %c0_0 = arith.constant 0 : index
    %0 = vector.load %arg5[%c0, %c0_0] : memref<16x150xbf16, #tpu.memory_space<vmem>>, vector<16x150xbf16>
    %c0_1 = arith.constant 0 : index
    %c0_2 = arith.constant 0 : index
    %1 = vector.load %arg1[%c0_1, %c0_2] : memref<150x50xbf16, #tpu.memory_space<vmem>>, vector<150x50xbf16>
    %cst = arith.constant dense<0.000000e+00> : vector<16x50xf32>
    %2 = tpu.matmul %0, %1, %cst {dimension_numbers = #tpu.dot_dimension_numbers<[1], [0], [0], [1], [0, 0, 1, 1], [], []>} : vector<16x150xbf16>, vector<150x50xbf16>, vector<16x50xf32> -> vector<16x50xf32>
    %c0_3 = arith.constant 0 : index
    %c0_4 = arith.constant 0 : index
    %3 = vector.load %arg2[%c0_3, %c0_4] : memref<150x50xbf16, #tpu.memory_space<vmem>>, vector<150x50xbf16>
    %cst_5 = arith.constant dense<0.000000e+00> : vector<16x50xf32>
    %4 = tpu.matmul %0, %3, %cst_5 {dimension_numbers = #tpu.dot_dimension_numbers<[1], [0], [0], [1], [0, 0, 1, 1], [], []>} : vector<16x150xbf16>, vector<150x50xbf16>, vector<16x50xf32> -> vector<16x50xf32>
    %5 = arith.maximumf %2, %4 : vector<16x50xf32>
    %c0_6 = arith.constant 0 : index
    %c0_7 = arith.constant 0 : index
    %6 = vector.load %arg3[%c0_6, %c0_7] : memref<150x50xbf16, #tpu.memory_space<vmem>>, vector<150x50xbf16>
    %cst_8 = arith.constant dense<0.000000e+00> : vector<16x50xf32>
    %7 = tpu.matmul %0, %6, %cst_8 {dimension_numbers = #tpu.dot_dimension_numbers<[1], [0], [0], [1], [0, 0, 1, 1], [], []>} : vector<16x150xbf16>, vector<150x50xbf16>, vector<16x50xf32> -> vector<16x50xf32>
    %8 = arith.maximumf %5, %7 : vector<16x50xf32>
    %c0_9 = arith.constant 0 : index
    %c0_10 = arith.constant 0 : index
    %9 = vector.load %arg4[%c0_9, %c0_10] : memref<150x50xbf16, #tpu.memory_space<vmem>>, vector<150x50xbf16>
    %cst_11 = arith.constant dense<0.000000e+00> : vector<16x50xf32>
    %10 = tpu.matmul %0, %9, %cst_11 {dimension_numbers = #tpu.dot_dimension_numbers<[1], [0], [0], [1], [0, 0, 1, 1], [], []>} : vector<16x150xbf16>, vector<150x50xbf16>, vector<16x50xf32> -> vector<16x50xf32>
    %11 = arith.maximumf %8, %10 : vector<16x50xf32>
    %c0_12 = arith.constant 0 : index
    %c0_13 = arith.constant 0 : index
    %12 = vector.load %arg6[%c0_12, %c0_13] : memref<16x1xf32, #tpu.memory_space<vmem>>, vector<16x1xf32>
    %13 = vector.broadcast %12 : vector<16x1xf32> to vector<16x50xf32>
    %14 = arith.addf %11, %13 : vector<16x50xf32>
    %cst_14 = arith.constant 0.000000e+00 : f32
    %15 = vector.broadcast %cst_14 : f32 to vector<16x50xf32>
    %16 = arith.maximumf %14, %15 : vector<16x50xf32>
    %17 = vector.extract_strided_slice %16 {offsets = [0, 0], sizes = [1, 25], strides = [1, 1]} : vector<16x50xf32> to vector<1x25xf32>
    %c0_15 = arith.constant 0 : index
    %c0_16 = arith.constant 0 : index
    %18 = vector.load %arg14[%c0_15, %c0_16] : memref<2x400xf32, #tpu.memory_space<vmem>>, vector<1x25xf32>
    tpu.vector_store %arg14[%c0_15, %c0_16], %17 {strides = array<i32>} : memref<2x400xf32, #tpu.memory_space<vmem>>, vector<1x25xf32>,
    %19 = vector.extract_strided_slice %16 {offsets = [1, 0], sizes = [1, 25], strides = [1, 1]} : vector<16x50xf32> to vector<1x25xf32>
    %c0_17 = arith.constant 0 : index
    %c25 = arith.constant 25 : index
    %20 = vector.load %arg14[%c0_17, %c25] : memref<2x400xf32, #tpu.memory_space<vmem>>, vector<1x25xf32>
    tpu.vector_store %arg14[%c0_17, %c25], %19 {strides = array<i32>} : memref<2x400xf32, #tpu.memory_space<vmem>>, vector<1x25xf32>,
    %21 = vector.extract_strided_slice %16 {offsets = [2, 0], sizes = [1, 25], strides = [1, 1]} : vector<16x50xf32> to vector<1x25xf32>
    %c0_18 = arith.constant 0 : index
    %c50 = arith.constant 50 : index
    %22 = vector.load %arg14[%c0_18, %c50] : memref<2x400xf32, #tpu.memory_space<vmem>>, vector<1x25xf32>
    tpu.vector_store %arg14[%c0_18, %c50], %21 {strides = array<i32>} : memref<2x400xf32, #tpu.memory_space<vmem>>, vector<1x25xf32>,
    %23 = vector.extract_strided_slice %16 {offsets = [3, 0], sizes = [1, 25], strides = [1, 1]} : vector<16x50xf32> to vector<1x25xf32>
    %c0_19 = arith.constant 0 : index
    %c75 = arith.constant 75 : index
    %24 = vector.load %arg14[%c0_19, %c75] : memref<2x400xf32, #tpu.memory_space<vmem>>, vector<1x25xf32>
    tpu.vector_store %arg14[%c0_19, %c75], %23 {strides = array<i32>} : memref<2x400xf32, #tpu.memory_space<vmem>>, vector<1x25xf32>,
    %25 = vector.extract_strided_slice %16 {offsets = [4, 0], sizes = [1, 25], strides = [1, 1]} : vector<16x50xf32> to vector<1x25xf32>
    %c0_20 = arith.constant 0 : index
    %c100 = arith.constant 100 : index
    %26 = vector.load %arg14[%c0_20, %c100] : memref<2x400xf32, #tpu.memory_space<vmem>>, vector<1x25xf32>
    tpu.vector_store %arg14[%c0_20, %c100], %25 {strides = array<i32>} : memref<2x400xf32, #tpu.memory_space<vmem>>, vector<1x25xf32>,
    %27 = vector.extract_strided_slice %16 {offsets = [5, 0], sizes = [1, 25], strides = [1, 1]} : vector<16x50xf32> to vector<1x25xf32>
    %c0_21 = arith.constant 0 : index
    %c125 = arith.constant 125 : index
    %28 = vector.load %arg14[%c0_21, %c125] : memref<2x400xf32, #tpu.memory_space<vmem>>, vector<1x25xf32>
    tpu.vector_store %arg14[%c0_21, %c125], %27 {strides = array<i32>} : memref<2x400xf32, #tpu.memory_space<vmem>>, vector<1x25xf32>,
    %29 = vector.extract_strided_slice %16 {offsets = [6, 0], sizes = [1, 25], strides = [1, 1]} : vector<16x50xf32> to vector<1x25xf32>
    %c0_22 = arith.constant 0 : index
    %c150 = arith.constant 150 : index
    %30 = vector.load %arg14[%c0_22, %c150] : memref<2x400xf32, #tpu.memory_space<vmem>>, vector<1x25xf32>
    tpu.vector_store %arg14[%c0_22, %c150], %29 {strides = array<i32>} : memref<2x400xf32, #tpu.memory_space<vmem>>, vector<1x25xf32>,
    %31 = vector.extract_strided_slice %16 {offsets = [7, 0], sizes = [1, 25], strides = [1, 1]} : vector<16x50xf32> to vector<1x25xf32>
    %c0_23 = arith.constant 0 : index
    %c175 = arith.constant 175 : index
    %32 = vector.load %arg14[%c0_23, %c175] : memref<2x400xf32, #tpu.memory_space<vmem>>, vector<1x25xf32>
    tpu.vector_store %arg14[%c0_23, %c175], %31 {strides = array<i32>} : memref<2x400xf32, #tpu.memory_space<vmem>>, vector<1x25xf32>,
    %33 = vector.extract_strided_slice %16 {offsets = [8, 0], sizes = [1, 25], strides = [1, 1]} : vector<16x50xf32> to vector<1x25xf32>
    %c0_24 = arith.constant 0 : index
    %c200 = arith.constant 200 : index
    %34 = vector.load %arg14[%c0_24, %c200] : memref<2x400xf32, #tpu.memory_space<vmem>>, vector<1x25xf32>
    tpu.vector_store %arg14[%c0_24, %c200], %33 {strides = array<i32>} : memref<2x400xf32, #tpu.memory_space<vmem>>, vector<1x25xf32>,
    %35 = vector.extract_strided_slice %16 {offsets = [9, 0], sizes = [1, 25], strides = [1, 1]} : vector<16x50xf32> to vector<1x25xf32>
    %c0_25 = arith.constant 0 : index
    %c225 = arith.constant 225 : index
    %36 = vector.load %arg14[%c0_25, %c225] : memref<2x400xf32, #tpu.memory_space<vmem>>, vector<1x25xf32>
    tpu.vector_store %arg14[%c0_25, %c225], %35 {strides = array<i32>} : memref<2x400xf32, #tpu.memory_space<vmem>>, vector<1x25xf32>,
    %37 = vector.extract_strided_slice %16 {offsets = [10, 0], sizes = [1, 25], strides = [1, 1]} : vector<16x50xf32> to vector<1x25xf32>
    %c0_26 = arith.constant 0 : index
    %c250 = arith.constant 250 : index
    %38 = vector.load %arg14[%c0_26, %c250] : memref<2x400xf32, #tpu.memory_space<vmem>>, vector<1x25xf32>
    tpu.vector_store %arg14[%c0_26, %c250], %37 {strides = array<i32>} : memref<2x400xf32, #tpu.memory_space<vmem>>, vector<1x25xf32>,
    %39 = vector.extract_strided_slice %16 {offsets = [11, 0], sizes = [1, 25], strides = [1, 1]} : vector<16x50xf32> to vector<1x25xf32>
    %c0_27 = arith.constant 0 : index
    %c275 = arith.constant 275 : index
    %40 = vector.load %arg14[%c0_27, %c275] : memref<2x400xf32, #tpu.memory_space<vmem>>, vector<1x25xf32>
    tpu.vector_store %arg14[%c0_27, %c275], %39 {strides = array<i32>} : memref<2x400xf32, #tpu.memory_space<vmem>>, vector<1x25xf32>,
    %41 = vector.extract_strided_slice %16 {offsets = [12, 0], sizes = [1, 25], strides = [1, 1]} : vector<16x50xf32> to vector<1x25xf32>
    %c0_28 = arith.constant 0 : index
    %c300 = arith.constant 300 : index
    %42 = vector.load %arg14[%c0_28, %c300] : memref<2x400xf32, #tpu.memory_space<vmem>>, vector<1x25xf32>
    tpu.vector_store %arg14[%c0_28, %c300], %41 {strides = array<i32>} : memref<2x400xf32, #tpu.memory_space<vmem>>, vector<1x25xf32>,
    %43 = vector.extract_strided_slice %16 {offsets = [13, 0], sizes = [1, 25], strides = [1, 1]} : vector<16x50xf32> to vector<1x25xf32>
    %c0_29 = arith.constant 0 : index
    %c325 = arith.constant 325 : index
    %44 = vector.load %arg14[%c0_29, %c325] : memref<2x400xf32, #tpu.memory_space<vmem>>, vector<1x25xf32>
    tpu.vector_store %arg14[%c0_29, %c325], %43 {strides = array<i32>} : memref<2x400xf32, #tpu.memory_space<vmem>>, vector<1x25xf32>,
    %45 = vector.extract_strided_slice %16 {offsets = [14, 0], sizes = [1, 25], strides = [1, 1]} : vector<16x50xf32> to vector<1x25xf32>
    %c0_30 = arith.constant 0 : index
    %c350 = arith.constant 350 : index
    %46 = vector.load %arg14[%c0_30, %c350] : memref<2x400xf32, #tpu.memory_space<vmem>>, vector<1x25xf32>
    tpu.vector_store %arg14[%c0_30, %c350], %45 {strides = array<i32>} : memref<2x400xf32, #tpu.memory_space<vmem>>, vector<1x25xf32>,
    %47 = vector.extract_strided_slice %16 {offsets = [15, 0], sizes = [1, 25], strides = [1, 1]} : vector<16x50xf32> to vector<1x25xf32>
    %c0_31 = arith.constant 0 : index
    %c375 = arith.constant 375 : index
    %48 = vector.load %arg14[%c0_31, %c375] : memref<2x400xf32, #tpu.memory_space<vmem>>, vector<1x25xf32>
    tpu.vector_store %arg14[%c0_31, %c375], %47 {strides = array<i32>} : memref<2x400xf32, #tpu.memory_space<vmem>>, vector<1x25xf32>,
    %49 = vector.extract_strided_slice %16 {offsets = [0, 25], sizes = [1, 25], strides = [1, 1]} : vector<16x50xf32> to vector<1x25xf32>
    %c1 = arith.constant 1 : index
    %c0_32 = arith.constant 0 : index
    %50 = vector.load %arg14[%c1, %c0_32] : memref<2x400xf32, #tpu.memory_space<vmem>>, vector<1x25xf32>
    tpu.vector_store %arg14[%c1, %c0_32], %49 {strides = array<i32>} : memref<2x400xf32, #tpu.memory_space<vmem>>, vector<1x25xf32>,
    %51 = vector.extract_strided_slice %16 {offsets = [1, 25], sizes = [1, 25], strides = [1, 1]} : vector<16x50xf32> to vector<1x25xf32>
    %c1_33 = arith.constant 1 : index
    %c25_34 = arith.constant 25 : index
    %52 = vector.load %arg14[%c1_33, %c25_34] : memref<2x400xf32, #tpu.memory_space<vmem>>, vector<1x25xf32>
    tpu.vector_store %arg14[%c1_33, %c25_34], %51 {strides = array<i32>} : memref<2x400xf32, #tpu.memory_space<vmem>>, vector<1x25xf32>,
    %53 = vector.extract_strided_slice %16 {offsets = [2, 25], sizes = [1, 25], strides = [1, 1]} : vector<16x50xf32> to vector<1x25xf32>
    %c1_35 = arith.constant 1 : index
    %c50_36 = arith.constant 50 : index
    %54 = vector.load %arg14[%c1_35, %c50_36] : memref<2x400xf32, #tpu.memory_space<vmem>>, vector<1x25xf32>
    tpu.vector_store %arg14[%c1_35, %c50_36], %53 {strides = array<i32>} : memref<2x400xf32, #tpu.memory_space<vmem>>, vector<1x25xf32>,
    %55 = vector.extract_strided_slice %16 {offsets = [3, 25], sizes = [1, 25], strides = [1, 1]} : vector<16x50xf32> to vector<1x25xf32>
    %c1_37 = arith.constant 1 : index
    %c75_38 = arith.constant 75 : index
    %56 = vector.load %arg14[%c1_37, %c75_38] : memref<2x400xf32, #tpu.memory_space<vmem>>, vector<1x25xf32>
    tpu.vector_store %arg14[%c1_37, %c75_38], %55 {strides = array<i32>} : memref<2x400xf32, #tpu.memory_space<vmem>>, vector<1x25xf32>,
    %57 = vector.extract_strided_slice %16 {offsets = [4, 25], sizes = [1, 25], strides = [1, 1]} : vector<16x50xf32> to vector<1x25xf32>
    %c1_39 = arith.constant 1 : index
    %c100_40 = arith.constant 100 : index
    %58 = vector.load %arg14[%c1_39, %c100_40] : memref<2x400xf32, #tpu.memory_space<vmem>>, vector<1x25xf32>
    tpu.vector_store %arg14[%c1_39, %c100_40], %57 {strides = array<i32>} : memref<2x400xf32, #tpu.memory_space<vmem>>, vector<1x25xf32>,
    %59 = vector.extract_strided_slice %16 {offsets = [5, 25], sizes = [1, 25], strides = [1, 1]} : vector<16x50xf32> to vector<1x25xf32>
    %c1_41 = arith.constant 1 : index
    %c125_42 = arith.constant 125 : index
    %60 = vector.load %arg14[%c1_41, %c125_42] : memref<2x400xf32, #tpu.memory_space<vmem>>, vector<1x25xf32>
    tpu.vector_store %arg14[%c1_41, %c125_42], %59 {strides = array<i32>} : memref<2x400xf32, #tpu.memory_space<vmem>>, vector<1x25xf32>,
    %61 = vector.extract_strided_slice %16 {offsets = [6, 25], sizes = [1, 25], strides = [1, 1]} : vector<16x50xf32> to vector<1x25xf32>
    %c1_43 = arith.constant 1 : index
    %c150_44 = arith.constant 150 : index
    %62 = vector.load %arg14[%c1_43, %c150_44] : memref<2x400xf32, #tpu.memory_space<vmem>>, vector<1x25xf32>
    tpu.vector_store %arg14[%c1_43, %c150_44], %61 {strides = array<i32>} : memref<2x400xf32, #tpu.memory_space<vmem>>, vector<1x25xf32>,
    %63 = vector.extract_strided_slice %16 {offsets = [7, 25], sizes = [1, 25], strides = [1, 1]} : vector<16x50xf32> to vector<1x25xf32>
    %c1_45 = arith.constant 1 : index
    %c175_46 = arith.constant 175 : index
    %64 = vector.load %arg14[%c1_45, %c175_46] : memref<2x400xf32, #tpu.memory_space<vmem>>, vector<1x25xf32>
    tpu.vector_store %arg14[%c1_45, %c175_46], %63 {strides = array<i32>} : memref<2x400xf32, #tpu.memory_space<vmem>>, vector<1x25xf32>,
    %65 = vector.extract_strided_slice %16 {offsets = [8, 25], sizes = [1, 25], strides = [1, 1]} : vector<16x50xf32> to vector<1x25xf32>
    %c1_47 = arith.constant 1 : index
    %c200_48 = arith.constant 200 : index
    %66 = vector.load %arg14[%c1_47, %c200_48] : memref<2x400xf32, #tpu.memory_space<vmem>>, vector<1x25xf32>
    tpu.vector_store %arg14[%c1_47, %c200_48], %65 {strides = array<i32>} : memref<2x400xf32, #tpu.memory_space<vmem>>, vector<1x25xf32>,
    %67 = vector.extract_strided_slice %16 {offsets = [9, 25], sizes = [1, 25], strides = [1, 1]} : vector<16x50xf32> to vector<1x25xf32>
    %c1_49 = arith.constant 1 : index
    %c225_50 = arith.constant 225 : index
    %68 = vector.load %arg14[%c1_49, %c225_50] : memref<2x400xf32, #tpu.memory_space<vmem>>, vector<1x25xf32>
    tpu.vector_store %arg14[%c1_49, %c225_50], %67 {strides = array<i32>} : memref<2x400xf32, #tpu.memory_space<vmem>>, vector<1x25xf32>,
    %69 = vector.extract_strided_slice %16 {offsets = [10, 25], sizes = [1, 25], strides = [1, 1]} : vector<16x50xf32> to vector<1x25xf32>
    %c1_51 = arith.constant 1 : index
    %c250_52 = arith.constant 250 : index
    %70 = vector.load %arg14[%c1_51, %c250_52] : memref<2x400xf32, #tpu.memory_space<vmem>>, vector<1x25xf32>
    tpu.vector_store %arg14[%c1_51, %c250_52], %69 {strides = array<i32>} : memref<2x400xf32, #tpu.memory_space<vmem>>, vector<1x25xf32>,
    %71 = vector.extract_strided_slice %16 {offsets = [11, 25], sizes = [1, 25], strides = [1, 1]} : vector<16x50xf32> to vector<1x25xf32>
    %c1_53 = arith.constant 1 : index
    %c275_54 = arith.constant 275 : index
    %72 = vector.load %arg14[%c1_53, %c275_54] : memref<2x400xf32, #tpu.memory_space<vmem>>, vector<1x25xf32>
    tpu.vector_store %arg14[%c1_53, %c275_54], %71 {strides = array<i32>} : memref<2x400xf32, #tpu.memory_space<vmem>>, vector<1x25xf32>,
    %73 = vector.extract_strided_slice %16 {offsets = [12, 25], sizes = [1, 25], strides = [1, 1]} : vector<16x50xf32> to vector<1x25xf32>
    %c1_55 = arith.constant 1 : index
    %c300_56 = arith.constant 300 : index
    %74 = vector.load %arg14[%c1_55, %c300_56] : memref<2x400xf32, #tpu.memory_space<vmem>>, vector<1x25xf32>
    tpu.vector_store %arg14[%c1_55, %c300_56], %73 {strides = array<i32>} : memref<2x400xf32, #tpu.memory_space<vmem>>, vector<1x25xf32>,
    %75 = vector.extract_strided_slice %16 {offsets = [13, 25], sizes = [1, 25], strides = [1, 1]} : vector<16x50xf32> to vector<1x25xf32>
    %c1_57 = arith.constant 1 : index
    %c325_58 = arith.constant 325 : index
    %76 = vector.load %arg14[%c1_57, %c325_58] : memref<2x400xf32, #tpu.memory_space<vmem>>, vector<1x25xf32>
    tpu.vector_store %arg14[%c1_57, %c325_58], %75 {strides = array<i32>} : memref<2x400xf32, #tpu.memory_space<vmem>>, vector<1x25xf32>,
    %77 = vector.extract_strided_slice %16 {offsets = [14, 25], sizes = [1, 25], strides = [1, 1]} : vector<16x50xf32> to vector<1x25xf32>
    %c1_59 = arith.constant 1 : index
    %c350_60 = arith.constant 350 : index
    %78 = vector.load %arg14[%c1_59, %c350_60] : memref<2x400xf32, #tpu.memory_space<vmem>>, vector<1x25xf32>
    tpu.vector_store %arg14[%c1_59, %c350_60], %77 {strides = array<i32>} : memref<2x400xf32, #tpu.memory_space<vmem>>, vector<1x25xf32>,
    %79 = vector.extract_strided_slice %16 {offsets = [15, 25], sizes = [1, 25], strides = [1, 1]} : vector<16x50xf32> to vector<1x25xf32>
    %c1_61 = arith.constant 1 : index
    %c375_62 = arith.constant 375 : index
    %80 = vector.load %arg14[%c1_61, %c375_62] : memref<2x400xf32, #tpu.memory_space<vmem>>, vector<1x25xf32>
    tpu.vector_store %arg14[%c1_61, %c375_62], %79 {strides = array<i32>} : memref<2x400xf32, #tpu.memory_space<vmem>>, vector<1x25xf32>,
    %c0_63 = arith.constant 0 : index
    %c0_64 = arith.constant 0 : index
    %81 = vector.load %arg14[%c0_63, %c0_64] : memref<2x400xf32, #tpu.memory_space<vmem>>, vector<2x400xf32>
    %c0_65 = arith.constant 0 : index
    %c0_66 = arith.constant 0 : index
    %82 = vector.load %arg7[%c0_65, %c0_66] : memref<400x120xf32, #tpu.memory_space<vmem>>, vector<400x120xf32>
    %cst_67 = arith.constant dense<0.000000e+00> : vector<2x120xf32>
    %83 = tpu.matmul %81, %82, %cst_67 {dimension_numbers = #tpu.dot_dimension_numbers<[1], [0], [0], [1], [0, 0, 1, 1], [], []>} : vector<2x400xf32>, vector<400x120xf32>, vector<2x120xf32> -> vector<2x120xf32>
    %c0_68 = arith.constant 0 : index
    %c0_69 = arith.constant 0 : index
    %84 = vector.load %arg8[%c0_68, %c0_69] : memref<1x120xf32, #tpu.memory_space<vmem>>, vector<1x120xf32>
    %85 = vector.broadcast %84 : vector<1x120xf32> to vector<2x120xf32>
    %86 = arith.addf %83, %85 : vector<2x120xf32>
    %cst_70 = arith.constant 0.000000e+00 : f32
    %87 = vector.broadcast %cst_70 : f32 to vector<2x120xf32>
    %88 = arith.maximumf %86, %87 : vector<2x120xf32>
    %c0_71 = arith.constant 0 : index
    %c0_72 = arith.constant 0 : index
    %89 = vector.load %arg9[%c0_71, %c0_72] : memref<120x84xf32, #tpu.memory_space<vmem>>, vector<120x84xf32>
    %cst_73 = arith.constant dense<0.000000e+00> : vector<2x84xf32>
    %90 = tpu.matmul %88, %89, %cst_73 {dimension_numbers = #tpu.dot_dimension_numbers<[1], [0], [0], [1], [0, 0, 1, 1], [], []>} : vector<2x120xf32>, vector<120x84xf32>, vector<2x84xf32> -> vector<2x84xf32>
    %c0_74 = arith.constant 0 : index
    %c0_75 = arith.constant 0 : index
    %91 = vector.load %arg10[%c0_74, %c0_75] : memref<1x84xf32, #tpu.memory_space<vmem>>, vector<1x84xf32>
    %92 = vector.broadcast %91 : vector<1x84xf32> to vector<2x84xf32>
    %93 = arith.addf %90, %92 : vector<2x84xf32>
    %cst_76 = arith.constant 0.000000e+00 : f32
    %94 = vector.broadcast %cst_76 : f32 to vector<2x84xf32>
    %95 = arith.maximumf %93, %94 : vector<2x84xf32>
    %c0_77 = arith.constant 0 : index
    %c0_78 = arith.constant 0 : index
    %96 = vector.load %arg11[%c0_77, %c0_78] : memref<84x10xf32, #tpu.memory_space<vmem>>, vector<84x10xf32>
    %cst_79 = arith.constant dense<0.000000e+00> : vector<2x10xf32>
    %97 = tpu.matmul %95, %96, %cst_79 {dimension_numbers = #tpu.dot_dimension_numbers<[1], [0], [0], [1], [0, 0, 1, 1], [], []>} : vector<2x84xf32>, vector<84x10xf32>, vector<2x10xf32> -> vector<2x10xf32>
    %c0_80 = arith.constant 0 : index
    %c0_81 = arith.constant 0 : index
    %98 = vector.load %arg12[%c0_80, %c0_81] : memref<1x10xf32, #tpu.memory_space<vmem>>, vector<1x10xf32>
    %99 = vector.broadcast %98 : vector<1x10xf32> to vector<2x10xf32>
    %100 = arith.addf %97, %99 : vector<2x10xf32>
    %c0_82 = arith.constant 0 : index
    %c0_83 = arith.constant 0 : index
    %101 = vector.load %arg13[%c0_82, %c0_83] : memref<2x10xf32, #tpu.memory_space<vmem>>, vector<2x10xf32>
    tpu.vector_store %arg13[%c0_82, %c0_83], %100 {strides = array<i32>} : memref<2x10xf32, #tpu.memory_space<vmem>>, vector<2x10xf32>,
    return
  }
  func.func @transform_0(%arg0: i32) -> (i32, i32) {
    %c0_i32 = arith.constant 0 : i32
    %c0_i32_0 = arith.constant 0 : i32
    %c0_i32_1 = arith.constant 0 : i32
    return %c0_i32, %c0_i32_0 : i32, i32
  }
  func.func @transform_1(%arg0: i32) -> (i32, i32) {
    %c0_i32 = arith.constant 0 : i32
    %c0_i32_0 = arith.constant 0 : i32
    %c0_i32_1 = arith.constant 0 : i32
    return %c0_i32, %c0_i32_0 : i32, i32
  }
  func.func @transform_2(%arg0: i32) -> (i32, i32) {
    %c0_i32 = arith.constant 0 : i32
    %c0_i32_0 = arith.constant 0 : i32
    %c0_i32_1 = arith.constant 0 : i32
    return %c0_i32, %c0_i32_0 : i32, i32
  }
  func.func @transform_3(%arg0: i32) -> (i32, i32) {
    %c0_i32 = arith.constant 0 : i32
    %c0_i32_0 = arith.constant 0 : i32
    %c0_i32_1 = arith.constant 0 : i32
    return %c0_i32, %c0_i32_0 : i32, i32
  }
  func.func @transform_4(%arg0: i32) -> (i32, i32) {
    %c0_i32 = arith.constant 0 : i32
    %c0_i32_0 = arith.constant 0 : i32
    %c0_i32_1 = arith.constant 0 : i32
    return %c0_i32, %c0_i32_0 : i32, i32
  }
  func.func @transform_5(%arg0: i32) -> (i32, i32) {
    %c0_i32 = arith.constant 0 : i32
    %c0_i32_0 = arith.constant 0 : i32
    %c0_i32_1 = arith.constant 0 : i32
    return %c0_i32, %c0_i32_0 : i32, i32
  }
  func.func @transform_6(%arg0: i32) -> (i32, i32) {
    %c0_i32 = arith.constant 0 : i32
    %c0_i32_0 = arith.constant 0 : i32
    %c0_i32_1 = arith.constant 0 : i32
    return %c0_i32, %c0_i32_0 : i32, i32
  }
  func.func @transform_7(%arg0: i32) -> (i32, i32) {
    %c0_i32 = arith.constant 0 : i32
    %c0_i32_0 = arith.constant 0 : i32
    %c0_i32_1 = arith.constant 0 : i32
    return %c0_i32, %c0_i32_0 : i32, i32
  }
  func.func @transform_8(%arg0: i32) -> (i32, i32) {
    %c0_i32 = arith.constant 0 : i32
    %c0_i32_0 = arith.constant 0 : i32
    %c0_i32_1 = arith.constant 0 : i32
    return %c0_i32, %c0_i32_0 : i32, i32
  }
  func.func @transform_9(%arg0: i32) -> (i32, i32) {
    %c0_i32 = arith.constant 0 : i32
    %c0_i32_0 = arith.constant 0 : i32
    %c0_i32_1 = arith.constant 0 : i32
    return %c0_i32, %c0_i32_0 : i32, i32
  }
  func.func @transform_10(%arg0: i32) -> (i32, i32) {
    %c0_i32 = arith.constant 0 : i32
    %c0_i32_0 = arith.constant 0 : i32
    %c0_i32_1 = arith.constant 0 : i32
    return %c0_i32, %c0_i32_0 : i32, i32
  }
  func.func @transform_11(%arg0: i32) -> (i32, i32) {
    %c0_i32 = arith.constant 0 : i32
    %c0_i32_0 = arith.constant 0 : i32
    %c0_i32_1 = arith.constant 0 : i32
    return %c0_i32, %c0_i32_0 : i32, i32
  }
  func.func @transform_12(%arg0: i32) -> (i32, i32) {
    %c0_i32 = arith.constant 0 : i32
    %c0_i32_0 = arith.constant 0 : i32
    %c0_i32_1 = arith.constant 0 : i32
    return %c0_i32, %c0_i32_0 : i32, i32
  }
}

</mosaic_0001>

<bundles_post_ra>
// kernel: net_forward.2
= control target key start
LH: loop header
LB: loop body
LE: loop exit
PB: predicated region body
PF: predicated region fallthrough
CT: control target
= control target key end

     0   :  { %vm145_vm0 = vcmask 1044480   ;;  %vm146_vm1 = vcmask 1045504   ;;  %v1209_v2 = vmov 65535   ;;  %vm141_vm2 = vcmask 613376   ;;  %s1790_s0 = inlined_call_operand.vmem [shape: bf16[75,392], index: 0, kind: input, shape index: {}]   ;;  %s1791_s1 = inlined_call_operand.vmem [shape: bf16[75,392], index: 1, kind: input, shape index: {}]   ;;  %s1792_s4 = inlined_call_operand.vmem [shape: bf16[6,75], index: 4, kind: input, shape index: {}]   ;;  %s1793_s2 = inlined_call_operand.vmem [shape: bf16[75,392], index: 2, kind: input, shape index: {}]   ;;  %s1794_s3 = inlined_call_operand.vmem [shape: bf16[75,392], index: 3, kind: input, shape index: {}]   ;;  %s1795_s5 = inlined_call_operand.vmem [shape: f32[6,1], index: 5, kind: input, shape index: {}]   ;;  %s1796_s6 = inlined_call_operand.vmem [shape: bf16[6,392], index: 6, kind: output, shape index: {}]  }
   0x1   :  { %v856_v0 = vld [vmem:[%s1790_s0 + $0x80] sm:$0xf]  ;;  %v1144_v1 = vld [vmem:[%s1790_s0 + $0x8c] sm:$0x30]  ;;  %v147_v3 = vsel %vm145_vm0, 4294967295, %v1209_v2  ;;  %vm782_vm3 = vcmask 1042432  }
   0x2   :  { %v857_v4 = vor.u32 %v1144_v1, %v856_v0  ;;  %v1252_v5 = vsel %vm146_vm1, %v147_v3, 0  ;;  %v1142_v6 = vld [vmem:[%s1790_s0 + $0x84] sm:$0xf]  ;;  %v858_v7 = vld [vmem:[%s1790_s0 + $0x90] sm:$0x30]  ;;  %vm783_vm4 = vcmask 63492  }
   0x3   :  { %v861_v8 = vor.u32 %v1142_v6, %v858_v7  ;;  %v864_v9 = vld [vmem:[%s1790_s0 + $0x88] sm:$0xf]  ;;  %v1145_v10 = vld [vmem:[%s1790_s0 + $0x94] sm:$0x30]  ;;  %v1143_v11 = vld [vmem:[%s1790_s0 + $0x8c] sm:$0xf] }
   0x4   :  { %v150_v12 = vand.u32 %v857_v4, %v1252_v5  ;;  %v865_v13 = vor.u32 %v1145_v10, %v864_v9  ;;  %v866_v14 = vld [vmem:[%s1790_s0 + $0x98] sm:$0x30]  ;;  %v840_v15 = vld [vmem:[%s1790_s0 + $0x60] sm:$0xf]  ;;  %v1140_v16 = vld [vmem:[%s1790_s0 + $0x6c] sm:$0xf0] }
   0x5   :  { %v153_v17 = vand.u32 %v861_v8, %v1252_v5  ;;  %v869_v18 = vor.u32 %v1143_v11, %v866_v14  ;;  %v1138_v19 = vld [vmem:[%s1790_s0 + $0x64] sm:$0xf]  ;;  %v842_v20 = vld [vmem:[%s1790_s0 + $0x70] sm:$0xf0]  ;;  %v848_v21 = vld [vmem:[%s1790_s0 + $0x68] sm:$0xf]  ;;  %v841_v23 = vor.u32 %v1140_v16, %v840_v15 }
   0x6   :  { %164 = vmatpush.bf16.msra.mxu0 %v150_v12  ;;  %v156_v22 = vand.u32 %v865_v13, %v1252_v5  ;;  %v1141_v24 = vld [vmem:[%s1790_s0 + $0x74] sm:$0xf0]  ;;  %v1139_v25 = vld [vmem:[%s1790_s0 + $0x6c] sm:$0xf]  ;;  %v850_v26 = vld [vmem:[%s1790_s0 + $0x78] sm:$0xf0]  ;;  %v845_v28 = vor.u32 %v1138_v19, %v842_v20 }
   0x7   :  { %177 = vmatpush.bf16.msra.mxu1 %v153_v17  ;;  %v159_v27 = vand.u32 %v869_v18, %v1252_v5  ;;  %v824_v29 = vld [vmem:[%s1790_s0 + $0x40] sm:$0xf]  ;;  %v1136_v30 = vld [vmem:[%s1790_s0 + $0x4c] sm:$0xf0]  ;;  %v849_v31 = vor.u32 %v1141_v24, %v848_v21  ;;  %v1134_v32 = vld [vmem:[%s1790_s0 + $0x44] sm:$0xf]  ;;  %v853_v34 = vor.u32 %v1139_v25, %v850_v26 }
   0x8   :  { %190 = vmatpush.bf16.msra.mxu2 %v156_v22  ;;  %v826_v33 = vld [vmem:[%s1790_s0 + $0x50] sm:$0xf0]  ;;  %v832_v35 = vld [vmem:[%s1790_s0 + $0x48] sm:$0xf]  ;;  %v1137_v36 = vld [vmem:[%s1790_s0 + $0x54] sm:$0xf0]  ;;  %v825_v37 = vor.u32 %v1136_v30, %v824_v29 }
   0x9   :  { %203 = vmatpush.bf16.msra.mxu3 %v159_v27  ;;  %v1135_v38 = vld [vmem:[%s1790_s0 + $0x4c] sm:$0xf]  ;;  %v834_v39 = vld [vmem:[%s1790_s0 + $0x58] sm:$0xf0]  ;;  %v829_v40 = vor.u32 %v1134_v32, %v826_v33  ;;  %v808_v41 = vld [vmem:[%s1790_s0 + $0x20] sm:$0xf]  ;;  %v833_v44 = vor.u32 %v1137_v36, %v832_v35 }
   0xa   :  { %165 = vmatpush.bf16.msra.mxu0 %v841_v23  ;;  %v1132_v42 = vld [vmem:[%s1790_s0 + $0x2c] sm:$0xf0]  ;;  %v1130_v43 = vld [vmem:[%s1790_s0 + $0x24] sm:$0xf]  ;;  %v810_v45 = vld [vmem:[%s1790_s0 + $0x30] sm:$0xf0]  ;;  %v837_v48 = vor.u32 %v1135_v38, %v834_v39 }
   0xb   :  { %178 = vmatpush.bf16.msra.mxu1 %v845_v28  ;;  %v816_v46 = vld [vmem:[%s1790_s0 + $0x28] sm:$0xf]  ;;  %v1133_v47 = vld [vmem:[%s1790_s0 + $0x34] sm:$0xf0]  ;;  %v1131_v49 = vld [vmem:[%s1790_s0 + $0x2c] sm:$0xf]  ;;  %v809_v52 = vor.u32 %v1132_v42, %v808_v41  ;;  %v813_v56 = vor.u32 %v1130_v43, %v810_v45 }
   0xc   :  { %191 = vmatpush.bf16.msra.mxu2 %v849_v31  ;;  %v818_v50 = vld [vmem:[%s1790_s0 + $0x38] sm:$0xf0]  ;;  %v792_v51 = vld [vmem:[%s1790_s0] sm:$0xf]  ;;  %v1128_v53 = vld [vmem:[%s1790_s0 + $0xc] sm:$0xf0]  ;;  %v817_v61 = vor.u32 %v1133_v47, %v816_v46 }
   0xd   :  { %204 = vmatpush.bf16.msra.mxu3 %v853_v34  ;;  %v1126_v54 = vld [vmem:[%s1790_s0 + $0x4] sm:$0xf]  ;;  %v794_v55 = vld [vmem:[%s1790_s0 + $0x10] sm:$0xf0]  ;;  %v800_v57 = vld [vmem:[%s1790_s0 + $0x8] sm:$0xf]  ;;  %v821_v2 = vor.u32 %v1131_v49, %v818_v50  ;;  %v793_v9 = vor.u32 %v1128_v53, %v792_v51 }
   0xe   :  { %166 = vmatpush.bf16.msra.mxu0 %v825_v37  ;;  %v940_v58 = vld [vmem:[%s1791_s1 + $0x80] sm:$0xf]  ;;  %v1164_v59 = vld [vmem:[%s1791_s1 + $0x8c] sm:$0x30]  ;;  %v1162_v60 = vld [vmem:[%s1791_s1 + $0x84] sm:$0xf]  ;;  %v797_v13 = vor.u32 %v1126_v54, %v794_v55 }
   0xf   :  { %179 = vmatpush.bf16.msra.mxu1 %v829_v40  ;;  %v941_v62 = vor.u32 %v1164_v59, %v940_v58  ;;  %v942_v63 = vld [vmem:[%s1791_s1 + $0x90] sm:$0x30]  ;;  %v948_v0 = vld [vmem:[%s1791_s1 + $0x88] sm:$0xf]  ;;  %v1165_v1 = vld [vmem:[%s1791_s1 + $0x94] sm:$0x30] }
  0x10   :  { %192 = vmatpush.bf16.msra.mxu2 %v833_v44  ;;  %v1129_v3 = vld [vmem:[%s1790_s0 + $0x14] sm:$0xf0]  ;;  %v945_v4 = vor.u32 %v1162_v60, %v942_v63  ;;  %v949_v6 = vor.u32 %v1165_v1, %v948_v0  ;;  %v1163_v7 = vld [vmem:[%s1791_s1 + $0x8c] sm:$0xf]  ;;  %v950_v8 = vld [vmem:[%s1791_s1 + $0x98] sm:$0x30] }
  0x11   :  { %205 = vmatpush.bf16.msra.mxu3 %v837_v48  ;;  %v1127_v10 = vld [vmem:[%s1790_s0 + $0xc] sm:$0xf]  ;;  %v802_v11 = vld [vmem:[%s1790_s0 + $0x18] sm:$0xf0]  ;;  %v953_v12 = vor.u32 %v1163_v7, %v950_v8  ;;  %v330_v14 = vand.u32 %v941_v62, %v1252_v5  ;;  %v801_v15 = vor.u32 %v1129_v3, %v800_v57  ;;  %v924_v19 = vld [vmem:[%s1791_s1 + $0x60] sm:$0xf] }
  0x12   :  { %167 = vmatpush.bf16.msra.mxu0 %v809_v52  ;;  %v333_v16 = vand.u32 %v945_v4, %v1252_v5  ;;  %v805_v17 = vor.u32 %v1127_v10, %v802_v11  ;;  %v336_v18 = vand.u32 %v949_v6, %v1252_v5  ;;  %v1160_v20 = vld [vmem:[%s1791_s1 + $0x6c] sm:$0xf0]  ;;  %v1158_v21 = vld [vmem:[%s1791_s1 + $0x64] sm:$0xf]  ;;  %v926_v23 = vld [vmem:[%s1791_s1 + $0x70] sm:$0xf0] }
  0x13   :  { %180 = vmatpush.bf16.msra.mxu1 %v813_v56  ;;  %v339_v22 = vand.u32 %v953_v12, %v1252_v5  ;;  %v932_v24 = vld [vmem:[%s1791_s1 + $0x68] sm:$0xf]  ;;  %v1161_v25 = vld [vmem:[%s1791_s1 + $0x74] sm:$0xf0]  ;;  %v1421_v26 = vld [vmem:[%s1792_s4] sm:$0x7]  ;;  %v925_v29 = vor.u32 %v1160_v20, %v924_v19  ;;  %v929_v30 = vor.u32 %v1158_v21, %v926_v23 }
  0x14   :  { %193 = vmatpush.bf16.msra.mxu2 %v817_v61  ;;  %v1159_v27 = vld [vmem:[%s1791_s1 + $0x6c] sm:$0xf]  ;;  %v934_v28 = vld [vmem:[%s1791_s1 + $0x78] sm:$0xf0]  ;;  %v933_v31 = vor.u32 %v1161_v25, %v932_v24  ;;  %v908_v32 = vld [vmem:[%s1791_s1 + $0x40] sm:$0xf] }
  0x15   :  { %206 = vmatpush.bf16.msra.mxu3 %v821_v2  ;;  %v1156_v33 = vld [vmem:[%s1791_s1 + $0x4c] sm:$0xf0]  ;;  %v1154_v34 = vld [vmem:[%s1791_s1 + $0x44] sm:$0xf]  ;;  %v937_v35 = vor.u32 %v1159_v27, %v934_v28  ;;  %v910_v36 = vld [vmem:[%s1791_s1 + $0x50] sm:$0xf0] }
  0x16   :  { %168 = vmatpush.bf16.msra.mxu0 %v793_v9  ;;  %v916_v37 = vld [vmem:[%s1791_s1 + $0x48] sm:$0xf]  ;;  %v1157_v38 = vld [vmem:[%s1791_s1 + $0x54] sm:$0xf0]  ;;  %v1155_v39 = vld [vmem:[%s1791_s1 + $0x4c] sm:$0xf]  ;;  %v909_v41 = vor.u32 %v1156_v33, %v908_v32  ;;  %v913_v44 = vor.u32 %v1154_v34, %v910_v36 }
  0x17   :  { %181 = vmatpush.bf16.msra.mxu1 %v797_v13  ;;  %v918_v40 = vld [vmem:[%s1791_s1 + $0x58] sm:$0xf0]  ;;  %v892_v42 = vld [vmem:[%s1791_s1 + $0x20] sm:$0xf]  ;;  %v1152_v43 = vld [vmem:[%s1791_s1 + $0x2c] sm:$0xf0]  ;;  %v917_v45 = vor.u32 %v1157_v38, %v916_v37 }
  0x18   :  { %194 = vmatpush.bf16.msra.mxu2 %v801_v15  ;;  %v1150_v46 = vld [vmem:[%s1791_s1 + $0x24] sm:$0xf]  ;;  %v894_v47 = vld [vmem:[%s1791_s1 + $0x30] sm:$0xf0]  ;;  %v900_v48 = vld [vmem:[%s1791_s1 + $0x28] sm:$0xf]  ;;  %v921_v49 = vor.u32 %v1155_v39, %v918_v40  ;;  %v893_v58 = vor.u32 %v1152_v43, %v892_v42 }
  0x19   :  { %207 = vmatpush.bf16.msra.mxu3 %v805_v17  ;;  %870 = vmatmul.msk.bf16.vlgmr.msra.gmra.mxu0 %vm141_vm2, %v1421_v26  ;;  %v1153_v50 = vld [vmem:[%s1791_s1 + $0x34] sm:$0xf0]  ;;  %v1151_v51 = vld [vmem:[%s1791_s1 + $0x2c] sm:$0xf]  ;;  %v902_v52 = vld [vmem:[%s1791_s1 + $0x38] sm:$0xf0]  ;;  %v897_v62 = vor.u32 %v1150_v46, %v894_v47 }
  0x1a   :  { %344 = vmatpush.bf16.msrb.mxu0 %v330_v14  ;;  %871 = vmatmul.msk.bf16.vlgmr.msra.gmra.mxu1 %vm141_vm2, %v1421_v26  ;;  %v876_v53 = vld [vmem:[%s1791_s1] sm:$0xf]  ;;  %v1148_v54 = vld [vmem:[%s1791_s1 + $0xc] sm:$0xf0]  ;;  %v1182_v57 = vld [vmem:[%s1793_s2 + $0x84] sm:$0xf]  ;;  %v901_v63 = vor.u32 %v1153_v50, %v900_v48  ;;  %v905_v3 = vor.u32 %v1151_v51, %v902_v52 }
  0x1b   :  { %357 = vmatpush.bf16.msrb.mxu1 %v333_v16  ;;  %872 = vmatmul.msk.bf16.vlgmr.msra.gmra.mxu2 %vm141_vm2, %v1421_v26  ;;  %v1024_v55 = vld [vmem:[%s1793_s2 + $0x80] sm:$0xf]  ;;  %v1184_v56 = vld [vmem:[%s1793_s2 + $0x8c] sm:$0x30]  ;;  %v1026_v59 = vld [vmem:[%s1793_s2 + $0x90] sm:$0x30]  ;;  %v877_v13 = vor.u32 %v1148_v54, %v876_v53 }
  0x1c   :  { %370 = vmatpush.bf16.msrb.mxu2 %v336_v18  ;;  %873 = vmatmul.msk.bf16.vlgmr.msra.gmra.mxu3 %vm141_vm2, %v1421_v26  ;;  %v1032_v60 = vld [vmem:[%s1793_s2 + $0x88] sm:$0xf]  ;;  %v1185_v61 = vld [vmem:[%s1793_s2 + $0x94] sm:$0x30]  ;;  %v1146_v0 = vld [vmem:[%s1791_s1 + $0x4] sm:$0xf]  ;;  %v1025_v8 = vor.u32 %v1184_v56, %v1024_v55  ;;  %v1029_v11 = vor.u32 %v1182_v57, %v1026_v59 }
  0x1d   :  { %383 = vmatpush.bf16.msrb.mxu3 %v339_v22  ;;  %v1183_v1 = vld [vmem:[%s1793_s2 + $0x8c] sm:$0xf]  ;;  %v1034_v2 = vld [vmem:[%s1793_s2 + $0x98] sm:$0x30]  ;;  %v878_v4 = vld [vmem:[%s1791_s1 + $0x10] sm:$0xf0]  ;;  %v1033_v12 = vor.u32 %v1185_v61, %v1032_v60 }
  0x1e   :  { %345 = vmatpush.bf16.msrb.mxu0 %v925_v29  ;;  %v884_v6 = vld [vmem:[%s1791_s1 + $0x8] sm:$0xf]  ;;  %v1149_v7 = vld [vmem:[%s1791_s1 + $0x14] sm:$0xf0]  ;;  %v1147_v9 = vld [vmem:[%s1791_s1 + $0xc] sm:$0xf]  ;;  %v1037_v14 = vor.u32 %v1183_v1, %v1034_v2  ;;  %v881_v15 = vor.u32 %v1146_v0, %v878_v4  ;;  %v514_v18 = vand.u32 %v1025_v8, %v1252_v5  ;;  %v517_v19 = vand.u32 %v1029_v11, %v1252_v5 }
  0x1f   :  { %358 = vmatpush.bf16.msrb.mxu1 %v929_v30  ;;  %v886_v10 = vld [vmem:[%s1791_s1 + $0x18] sm:$0xf0]  ;;  %v885_v16 = vor.u32 %v1149_v7, %v884_v6  ;;  %v520_v20 = vand.u32 %v1033_v12, %v1252_v5  ;;  %v1008_v21 = vld [vmem:[%s1793_s2 + $0x60] sm:$0xf]  ;;  %v1180_v22 = vld [vmem:[%s1793_s2 + $0x6c] sm:$0xf0] }
  0x20   :  { %371 = vmatpush.bf16.msrb.mxu2 %v933_v31  ;;  %v889_v17 = vor.u32 %v1147_v9, %v886_v10  ;;  %v1178_v23 = vld [vmem:[%s1793_s2 + $0x64] sm:$0xf]  ;;  %v523_v24 = vand.u32 %v1037_v14, %v1252_v5  ;;  %v1010_v25 = vld [vmem:[%s1793_s2 + $0x70] sm:$0xf0]  ;;  %v1016_v27 = vld [vmem:[%s1793_s2 + $0x68] sm:$0xf]  ;;  %v1009_v31 = vor.u32 %v1180_v22, %v1008_v21 }
  0x21   :  { %384 = vmatpush.bf16.msrb.mxu3 %v937_v35  ;;  %v1181_v28 = vld [vmem:[%s1793_s2 + $0x74] sm:$0xf0]  ;;  %v1179_v29 = vld [vmem:[%s1793_s2 + $0x6c] sm:$0xf]  ;;  %v1018_v30 = vld [vmem:[%s1793_s2 + $0x78] sm:$0xf0]  ;;  %v1013_v32 = vor.u32 %v1178_v23, %v1010_v25 }
  0x22   :  { %346 = vmatpush.bf16.msrb.mxu0 %v909_v41  ;;  %v1017_v33 = vor.u32 %v1181_v28, %v1016_v27  ;;  %v992_v34 = vld [vmem:[%s1793_s2 + $0x40] sm:$0xf]  ;;  %v1176_v35 = vld [vmem:[%s1793_s2 + $0x4c] sm:$0xf0]  ;;  %v1174_v36 = vld [vmem:[%s1793_s2 + $0x44] sm:$0xf]  ;;  %v1021_v37 = vor.u32 %v1179_v29, %v1018_v30 }
  0x23   :  { %359 = vmatpush.bf16.msrb.mxu1 %v913_v44  ;;  %v994_v38 = vld [vmem:[%s1793_s2 + $0x50] sm:$0xf0]  ;;  %v1000_v39 = vld [vmem:[%s1793_s2 + $0x48] sm:$0xf]  ;;  %v1177_v40 = vld [vmem:[%s1793_s2 + $0x54] sm:$0xf0]  ;;  %v993_v43 = vor.u32 %v1176_v35, %v992_v34 }
  0x24   :  { %372 = vmatpush.bf16.msrb.mxu2 %v917_v45  ;;  %v1175_v41 = vld [vmem:[%s1793_s2 + $0x4c] sm:$0xf]  ;;  %v1002_v42 = vld [vmem:[%s1793_s2 + $0x58] sm:$0xf0]  ;;  %v976_v44 = vld [vmem:[%s1793_s2 + $0x20] sm:$0xf]  ;;  %v997_v46 = vor.u32 %v1174_v36, %v994_v38  ;;  %v1001_v47 = vor.u32 %v1177_v40, %v1000_v39 }
  0x25   :  { %385 = vmatpush.bf16.msrb.mxu3 %v921_v49  ;;  %v1172_v45 = vld [vmem:[%s1793_s2 + $0x2c] sm:$0xf0]  ;;  %v1170_v48 = vld [vmem:[%s1793_s2 + $0x24] sm:$0xf]  ;;  %v978_v49 = vld [vmem:[%s1793_s2 + $0x30] sm:$0xf0]  ;;  %v1005_v51 = vor.u32 %v1175_v41, %v1002_v42 }
  0x26   :  { %347 = vmatpush.bf16.msrb.mxu0 %v893_v58  ;;  %v984_v50 = vld [vmem:[%s1793_s2 + $0x28] sm:$0xf]  ;;  %v1173_v52 = vld [vmem:[%s1793_s2 + $0x34] sm:$0xf0]  ;;  %v1171_v53 = vld [vmem:[%s1793_s2 + $0x2c] sm:$0xf]  ;;  %v977_v60 = vor.u32 %v1172_v45, %v976_v44  ;;  %v981_v0 = vor.u32 %v1170_v48, %v978_v49 }
  0x27   :  { %360 = vmatpush.bf16.msrb.mxu1 %v897_v62  ;;  %v986_v54 = vld [vmem:[%s1793_s2 + $0x38] sm:$0xf0]  ;;  %v960_v55 = vld [vmem:[%s1793_s2] sm:$0xf]  ;;  %v1168_v56 = vld [vmem:[%s1793_s2 + $0xc] sm:$0xf0]  ;;  %v985_v1 = vor.u32 %v1173_v52, %v984_v50 }
  0x28   :  { %373 = vmatpush.bf16.msrb.mxu2 %v901_v63  ;;  %v1108_v57 = vld [vmem:[%s1794_s3 + $0x80] sm:$0xf]  ;;  %v1204_v58 = vld [vmem:[%s1794_s3 + $0x8c] sm:$0x30]  ;;  %v1202_v59 = vld [vmem:[%s1794_s3 + $0x84] sm:$0xf]  ;;  %v989_v6 = vor.u32 %v1171_v53, %v986_v54 }
  0x29   :  { %386 = vmatpush.bf16.msrb.mxu3 %v905_v3  ;;  %v1110_v61 = vld [vmem:[%s1794_s3 + $0x90] sm:$0x30]  ;;  %v1116_v62 = vld [vmem:[%s1794_s3 + $0x88] sm:$0xf]  ;;  %v1205_v63 = vld [vmem:[%s1794_s3 + $0x94] sm:$0x30]  ;;  %v1109_v10 = vor.u32 %v1204_v58, %v1108_v57 }
  0x2a   :  { %348 = vmatpush.bf16.msrb.mxu0 %v877_v13  ;;  %v1166_v2 = vld [vmem:[%s1793_s2 + $0x4] sm:$0xf]  ;;  %v1203_v3 = vld [vmem:[%s1794_s3 + $0x8c] sm:$0xf]  ;;  %v1118_v4 = vld [vmem:[%s1794_s3 + $0x98] sm:$0x30]  ;;  %v1113_v13 = vor.u32 %v1202_v59, %v1110_v61  ;;  %v1117_v14 = vor.u32 %v1205_v63, %v1116_v62 }
  0x2b   :  { %361 = vmatpush.bf16.msrb.mxu1 %v881_v15  ;;  %v962_v7 = vld [vmem:[%s1793_s2 + $0x10] sm:$0xf0]  ;;  %v968_v8 = vld [vmem:[%s1793_s2 + $0x8] sm:$0xf]  ;;  %v1169_v9 = vld [vmem:[%s1793_s2 + $0x14] sm:$0xf0]  ;;  %v961_v15 = vor.u32 %v1168_v56, %v960_v55  ;;  %v698_v21 = vand.u32 %v1109_v10, %v1252_v5 }
  0x2c   :  { %374 = vmatpush.bf16.msrb.mxu2 %v885_v16  ;;  %v1167_v11 = vld [vmem:[%s1793_s2 + $0xc] sm:$0xf]  ;;  %v970_v12 = vld [vmem:[%s1793_s2 + $0x18] sm:$0xf0]  ;;  %v1121_v16 = vor.u32 %v1203_v3, %v1118_v4  ;;  %v1210_v22 = vmov 0   ;;  %v701_v23 = vand.u32 %v1113_v13, %v1252_v5  ;;  %vm784_vm5 = vmor %vm783_vm4, %vm782_vm3 }
  0x2d   :  { %387 = vmatpush.bf16.msrb.mxu3 %v889_v17  ;;  %954 = vmatmul.msk.bf16.vlgmr.msrb.gmra.mxu0 %vm141_vm2, %v1421_v26  ;;  %v965_v17 = vor.u32 %v1166_v2, %v962_v7  ;;  %v1092_v25 = vld [vmem:[%s1794_s3 + $0x60] sm:$0xf]  ;;  %v1200_v27 = vld [vmem:[%s1794_s3 + $0x6c] sm:$0xf0]  ;;  %v1198_v28 = vld [vmem:[%s1794_s3 + $0x64] sm:$0xf] }
  0x2e   :  { %528 = vmatpush.bf16.msra.mxu0 %v514_v18  ;;  %955 = vmatmul.msk.bf16.vlgmr.msrb.gmra.mxu1 %vm141_vm2, %v1421_v26  ;;  %v969_v18 = vor.u32 %v1169_v9, %v968_v8  ;;  %v707_v29 = vand.u32 %v1121_v16, %v1252_v5  ;;  %v1094_v30 = vld [vmem:[%s1794_s3 + $0x70] sm:$0xf0]  ;;  %v1093_v34 = vor.u32 %v1200_v27, %v1092_v25  ;;  %v1196_v38 = vld [vmem:[%s1794_s3 + $0x4c] sm:$0xf0]  ;;  %v1194_v39 = vld [vmem:[%s1794_s3 + $0x44] sm:$0xf] }
  0x2f   :  { %541 = vmatpush.bf16.msra.mxu1 %v517_v19  ;;  %956 = vmatmul.msk.bf16.vlgmr.msrb.gmra.mxu2 %vm141_vm2, %v1421_v26  ;;  %v765_v19 = vld [vmem:[%s1795_s5] sm:$0x3f]  ;;  %v1097_v35 = vor.u32 %v1198_v28, %v1094_v30  ;;  %v1078_v41 = vld [vmem:[%s1794_s3 + $0x50] sm:$0xf0]  ;;  %v1084_v42 = vld [vmem:[%s1794_s3 + $0x48] sm:$0xf] }
  0x30   :  { %554 = vmatpush.bf16.msra.mxu2 %v520_v20  ;;  %957 = vmatmul.msk.bf16.vlgmr.msrb.gmra.mxu3 %vm141_vm2, %v1421_v26  ;;  %v973_v20 = vor.u32 %v1167_v11, %v970_v12  ;;  %v1195_v44 = vld [vmem:[%s1794_s3 + $0x4c] sm:$0xf]  ;;  %v1086_v45 = vld [vmem:[%s1794_s3 + $0x58] sm:$0xf0]  ;;  %v1060_v49 = vld [vmem:[%s1794_s3 + $0x20] sm:$0xf] }
  0x31   :  { %567 = vmatpush.bf16.msra.mxu3 %v523_v24  ;;  %1208 = vset.pattern.permute.xlu0 %v1210_v22  ;;  %v704_v24 = vand.u32 %v1117_v14, %v1252_v5  ;;  %v1102_v5 = vld [vmem:[%s1794_s3 + $0x78] sm:$0xf0]  ;;  %v1192_v50 = vld [vmem:[%s1794_s3 + $0x2c] sm:$0xf0]  ;;  %v1089_v52 = vor.u32 %v1195_v44, %v1086_v45  ;;  %v1062_v53 = vld [vmem:[%s1794_s3 + $0x30] sm:$0xf0] }
  0x32   :  { %529 = vmatpush.bf16.msra.mxu0 %v1009_v31  ;;  %768 = vperm.xlu0 %1208, %v765_v19   ;;  %v1100_v31 = vld [vmem:[%s1794_s3 + $0x68] sm:$0xf]  ;;  %v1193_v55 = vld [vmem:[%s1794_s3 + $0x34] sm:$0xf0]  ;;  %v1191_v56 = vld [vmem:[%s1794_s3 + $0x2c] sm:$0xf]  ;;  %v1061_v58 = vor.u32 %v1192_v50, %v1060_v49 }
  0x33   :  { %542 = vmatpush.bf16.msra.mxu1 %v1013_v32  ;;  %v1201_v32 = vld [vmem:[%s1794_s3 + $0x74] sm:$0xf0]  ;;  %v1068_v54 = vld [vmem:[%s1794_s3 + $0x28] sm:$0xf]  ;;  %v1070_v57 = vld [vmem:[%s1794_s3 + $0x38] sm:$0xf0] }
  0x34   :  { %555 = vmatpush.bf16.msra.mxu2 %v1017_v33  ;;  %v1199_v33 = vld [vmem:[%s1794_s3 + $0x6c] sm:$0xf]  ;;  %v1101_v36 = vor.u32 %v1201_v32, %v1100_v31  ;;  %v1044_v61 = vld [vmem:[%s1794_s3] sm:$0xf]  ;;  %v1188_v62 = vld [vmem:[%s1794_s3 + $0xc] sm:$0xf0] }
  0x35   :  { %568 = vmatpush.bf16.msra.mxu3 %v1021_v37  ;;  %v1076_v37 = vld [vmem:[%s1794_s3 + $0x40] sm:$0xf]  ;;  %v1105_v40 = vor.u32 %v1199_v33, %v1102_v5  ;;  %v1186_v63 = vld [vmem:[%s1794_s3 + $0x4] sm:$0xf]  ;;  %v1052_v2 = vld [vmem:[%s1794_s3 + $0x8] sm:$0xf]  ;;  %v1045_v7 = vor.u32 %v1188_v62, %v1044_v61 }
  0x36   :  { %530 = vmatpush.bf16.msra.mxu0 %v993_v43  ;;  %v1197_v43 = vld [vmem:[%s1794_s3 + $0x54] sm:$0xf0]  ;;  %v1187_v4 = vld [vmem:[%s1794_s3 + $0xc] sm:$0xf] }
  0x37   :  { %543 = vmatpush.bf16.msra.mxu1 %v997_v46  ;;  %v1077_v46 = vor.u32 %v1196_v38, %v1076_v37  ;;  %v1085_v48 = vor.u32 %v1197_v43, %v1084_v42  ;;  %v1189_v3 = vld [vmem:[%s1794_s3 + $0x14] sm:$0xf0] }
  0x38   :  { %556 = vmatpush.bf16.msra.mxu2 %v1001_v47  ;;  %v1081_v47 = vor.u32 %v1194_v39, %v1078_v41  ;;  %v1053_v9 = vor.u32 %v1189_v3, %v1052_v2 }
  0x39   :  { %569 = vmatpush.bf16.msra.mxu3 %v1005_v51  ;;  %v1190_v51 = vld [vmem:[%s1794_s3 + $0x24] sm:$0xf] }
  0x3a   :  { %531 = vmatpush.bf16.msra.mxu0 %v977_v60  ;;  %v1065_v59 = vor.u32 %v1190_v51, %v1062_v53  ;;  %v1069_v60 = vor.u32 %v1193_v55, %v1068_v54 }
  0x3b   :  { %544 = vmatpush.bf16.msra.mxu1 %v981_v0  ;;  %v1073_v0 = vor.u32 %v1191_v56, %v1070_v57 }
  0x3c   :  { %557 = vmatpush.bf16.msra.mxu2 %v985_v1  ;;  %v1046_v1 = vld [vmem:[%s1794_s3 + $0x10] sm:$0xf0] }
  0x3d   :  { %570 = vmatpush.bf16.msra.mxu3 %v989_v6  ;;  %v1054_v6 = vld [vmem:[%s1794_s3 + $0x18] sm:$0xf0]  ;;  %v1049_v8 = vor.u32 %v1186_v63, %v1046_v1 }
  0x3e   :  { %532 = vmatpush.bf16.msra.mxu0 %v961_v15  ;;  %v1057_v10 = vor.u32 %v1187_v4, %v1054_v6 }
  0x3f   :  { %545 = vmatpush.bf16.msra.mxu1 %v965_v17 }
  0x40   :  { %558 = vmatpush.bf16.msra.mxu2 %v969_v18 }
  0x41   :  { %571 = vmatpush.bf16.msra.mxu3 %v973_v20  ;;  %1038 = vmatmul.msk.bf16.vlgmr.msra.gmra.mxu0 %vm141_vm2, %v1421_v26 }
  0x42   :  { %712 = vmatpush.bf16.msrb.mxu0 %v698_v21  ;;  %1039 = vmatmul.msk.bf16.vlgmr.msra.gmra.mxu1 %vm141_vm2, %v1421_v26 }
  0x43   :  { %725 = vmatpush.bf16.msrb.mxu1 %v701_v23  ;;  %1040 = vmatmul.msk.bf16.vlgmr.msra.gmra.mxu2 %vm141_vm2, %v1421_v26 }
  0x44   :  { %738 = vmatpush.bf16.msrb.mxu2 %v704_v24  ;;  %1041 = vmatmul.msk.bf16.vlgmr.msra.gmra.mxu3 %vm141_vm2, %v1421_v26 }
  0x45   :  { %751 = vmatpush.bf16.msrb.mxu3 %v707_v29 }
  0x46   :  { %713 = vmatpush.bf16.msrb.mxu0 %v1093_v34 }
  0x47   :  { %726 = vmatpush.bf16.msrb.mxu1 %v1097_v35 }
  0x48   :  { %739 = vmatpush.bf16.msrb.mxu2 %v1101_v36 }
  0x49   :  { %752 = vmatpush.bf16.msrb.mxu3 %v1105_v40 }
  0x4a   :  { %714 = vmatpush.bf16.msrb.mxu0 %v1077_v46 }
  0x4b   :  { %727 = vmatpush.bf16.msrb.mxu1 %v1081_v47 }
  0x4c   :  { %740 = vmatpush.bf16.msrb.mxu2 %v1085_v48 }
  0x4d   :  { %753 = vmatpush.bf16.msrb.mxu3 %v1089_v52 }
  0x4e   :  { %715 = vmatpush.bf16.msrb.mxu0 %v1061_v58 }
  0x4f   :  { %728 = vmatpush.bf16.msrb.mxu1 %v1065_v59 }
  0x50   :  { %741 = vmatpush.bf16.msrb.mxu2 %v1069_v60 }
  0x51   :  { %754 = vmatpush.bf16.msrb.mxu3 %v1073_v0 }
  0x52   :  { %716 = vmatpush.bf16.msrb.mxu0 %v1045_v7 }
  0x53   :  { %729 = vmatpush.bf16.msrb.mxu1 %v1049_v8 }
  0x54   :  { %742 = vmatpush.bf16.msrb.mxu2 %v1053_v9 }
  0x55   :  { %755 = vmatpush.bf16.msrb.mxu3 %v1057_v10  ;;  %1122 = vmatmul.msk.bf16.vlgmr.msrb.gmra.mxu0 %vm141_vm2, %v1421_v26 }
  0x56   :  { %1123 = vmatmul.msk.bf16.vlgmr.msrb.gmra.mxu1 %vm141_vm2, %v1421_v26 }
  0x57   :  { %1124 = vmatmul.msk.bf16.vlgmr.msrb.gmra.mxu2 %vm141_vm2, %v1421_v26 }
  0x58   :  { %1125 = vmatmul.msk.bf16.vlgmr.msrb.gmra.mxu3 %vm141_vm2, %v1421_v26 }
  0x96   :  { %v170_v11 = vpop.f32.mrf.mxu0 }
  0x97   :  { %v183_v12 = vpop.f32.mrf.mxu1 }
  0x9e   :  { %v196_v13 = vpop.f32.mrf.mxu2  ;;  %v172_v15 = vpop.f32.mrf.mxu0 }
  0x9f   :  { %v209_v14 = vpop.f32.mrf.mxu3  ;;  %v185_v16 = vpop.f32.mrf.mxu1 }
  0xa4   :  { %v769_v39 = vpop.permute.xlu0 %768 }
  0xa6   :  { %v198_v17 = vpop.f32.mrf.mxu2 }
  0xa7   :  { %v211_v18 = vpop.f32.mrf.mxu3 }
  0xaa   :  { %v350_v19 = vpop.f32.mrf.mxu0 }
  0xab   :  { %v363_v20 = vpop.f32.mrf.mxu1  ;;  %v393_v33 = vmax.f32 %v170_v11, %v350_v19 }
  0xac   :  { %v394_v5 = vmax.f32 %v183_v12, %v363_v20 }
  0xb2   :  { %v376_v21 = vpop.f32.mrf.mxu2  ;;  %v352_v23 = vpop.f32.mrf.mxu0 }
  0xb3   :  { %v389_v22 = vpop.f32.mrf.mxu3  ;;  %v365_v24 = vpop.f32.mrf.mxu1  ;;  %v395_v44 = vmax.f32 %v196_v13, %v376_v21 }
  0xb4   :  { %v396_v46 = vmax.f32 %v209_v14, %v389_v22 }
  0xba   :  { %v378_v25 = vpop.f32.mrf.mxu2 }
  0xbb   :  { %v391_v27 = vpop.f32.mrf.mxu3 }
  0xbe   :  { %v534_v28 = vpop.f32.mrf.mxu0 }
  0xbf   :  { %v547_v29 = vpop.f32.mrf.mxu1  ;;  %v577_v35 = vmax.f32 %v393_v33, %v534_v28 }
  0xc0   :  { %v578_v37 = vmax.f32 %v394_v5, %v547_v29 }
  0xc6   :  { %v560_v30 = vpop.f32.mrf.mxu2  ;;  %v536_v31 = vpop.f32.mrf.mxu0 }
  0xc7   :  { %v573_v26 = vpop.f32.mrf.mxu3  ;;  %v549_v32 = vpop.f32.mrf.mxu1  ;;  %v579_v48 = vmax.f32 %v395_v44, %v560_v30 }
  0xc8   :  { %v580_v50 = vmax.f32 %v396_v46, %v573_v26 }
  0xce   :  { %v562_v34 = vpop.f32.mrf.mxu2 }
  0xcf   :  { %v575_v36 = vpop.f32.mrf.mxu3 }
  0xd2   :  { %v718_v38 = vpop.f32.mrf.mxu0 }
  0xd3   :  { %v761_v40 = vmax.f32 %v577_v35, %v718_v38  ;;  %v731_v41 = vpop.f32.mrf.mxu1 }
  0xd4   :  { %v762_v42 = vmax.f32 %v578_v37, %v731_v41 }
  0xd5   :  { %v771_v43 = vadd.f32 %v769_v39, %v761_v40 }
  0xd6   :  { %v772_v45 = vadd.f32 %v769_v39, %v762_v42 }
  0xd7   :  { %v775_v47 = vmax.f32 %v771_v43, 0.0 }
  0xd8   :  { %v776_v49 = vmax.f32 %v772_v45, 0.0 }
  0xda   :  { %v744_v51 = vpop.f32.mrf.mxu2  ;;  %v779_v52 = vpack.c.bf16 %v776_v49, %v775_v47  ;;  %v720_v55 = vpop.f32.mrf.mxu0 }
  0xdb   :  { %v763_v53 = vmax.f32 %v579_v48, %v744_v51  ;;  %v757_v54 = vpop.f32.mrf.mxu3  ;;  %v733_v57 = vpop.f32.mrf.mxu1 }
  0xdc   :  { %v764_v56 = vmax.f32 %v580_v50, %v757_v54  ;;  %781 = vst [vmem:[%s1796_s6] sm:$0x77] %v779_v52 }
  0xdd   :  { %v773_v58 = vadd.f32 %v769_v39, %v763_v53 }
  0xde   :  { %v774_v59 = vadd.f32 %v769_v39, %v764_v56 }
  0xdf   :  { %v777_v60 = vmax.f32 %v773_v58, 0.0 }
  0xe0   :  { %v778_v61 = vmax.f32 %v774_v59, 0.0 }
  0xe2   :  { %v780_v62 = vpack.c.bf16 %v778_v61, %v777_v60  ;;  %v746_v63 = vpop.f32.mrf.mxu2 }
  0xe3   :  { %v759_v0 = vpop.f32.mrf.mxu3 }
  0xe4   :  { %785 = vst.msk [vmem:[%s1796_s6 + $0x8] sm:$0x77] %vm784_vm5, %v780_v62 }

// kernel: net_forward.3
= control target key start
LH: loop header
LB: loop body
LE: loop exit
PB: predicated region body
PF: predicated region fallthrough
CT: control target
= control target key end

     0   :  { %vm134_vm0 = vcmask 1042432   ;;  %vm130_vm1 = vcmask 179200   ;;  %s1881_s0 = inlined_call_operand.vmem [shape: bf16[150,50], index: 0, kind: input, shape index: {}]   ;;  %s1882_s1 = inlined_call_operand.vmem [shape: bf16[150,50], index: 1, kind: input, shape index: {}]   ;;  %s1883_s2 = inlined_call_operand.vmem [shape: bf16[150,50], index: 2, kind: input, shape index: {}]   ;;  %s1884_s3 = inlined_call_operand.vmem [shape: bf16[150,50], index: 3, kind: input, shape index: {}]   ;;  %s1885_s4 = inlined_call_operand.vmem [shape: bf16[16,150], index: 4, kind: input, shape index: {}]   ;;  %s1886_s5 = inlined_call_operand.vmem [shape: f32[16,1], index: 5, kind: input, shape index: {}]   ;;  %s1887_s6 = inlined_call_operand.vmem [shape: f32[400,120], index: 6, kind: input, shape index: {}]   ;;  %s1888_s7 = inlined_call_operand.vmem [shape: f32[1,120], index: 7, kind: input, shape index: {}]   ;;  %s1889_s8 = inlined_call_operand.vmem [shape: f32[120,84], index: 8, kind: input, shape index: {}]   ;;  %s1890_s9 = inlined_call_operand.vmem [shape: f32[1,84], index: 9, kind: input, shape index: {}]   ;;  %s1891_s10 = inlined_call_operand.vmem [shape: f32[84,10], index: 10, kind: input, shape index: {}]   ;;  %s1892_s11 = inlined_call_operand.vmem [shape: f32[1,10], index: 11, kind: input, shape index: {}]   ;;  %s1893_s12 = inlined_call_operand.hbm [shape: f32[2,10], index: 12, kind: output, shape index: {}]  }
   0x1   :  { %v1208_v0 = vld [vmem:[%s1881_s0 + $0x38] sm:$0xff]  ;;  %v63_v2 = vld [vmem:[%s1881_s0 + $0x48] sm:$0x7]  ;;  %v1207_v6 = vld [vmem:[%s1881_s0 + $0x30] sm:$0xff] }
   0x2   :  { %v1226_v1 = vld [vmem:[%s1883_s2 + $0x38] sm:$0xff]  ;;  %v110_v3 = vunpack.c.l.b16 %v63_v2  ;;  %v184_v4 = vld [vmem:[%s1882_s1 + $0x48] sm:$0x7]  ;;  %138 = vmatpush.bf16.msra.mxu0 %v1208_v0  ;;  %v1225_v8 = vld [vmem:[%s1883_s2 + $0x30] sm:$0xff] }
   0x3   :  { %354 = vmatpush.bf16.msra.mxu1 %v1226_v1  ;;  %v222_v5 = vunpack.c.l.b16 %v184_v4  ;;  %v293_v9 = vld [vmem:[%s1883_s2 + $0x48] sm:$0x7]  ;;  %v1209_v14 = vld [vmem:[%s1881_s0 + $0x40] sm:$0xff]  ;;  %v1217_v18 = vld [vmem:[%s1882_s1 + $0x38] sm:$0xff] }
   0x4   :  { %v120_v7 = vpack.c.b16 %v110_v3, %v110_v3  ;;  %v331_v11 = vunpack.c.l.b16 %v293_v9  ;;  %v1218_v15 = vld [vmem:[%s1882_s1 + $0x40] sm:$0xff]  ;;  %v1206_v16 = vld [vmem:[%s1881_s0 + $0x28] sm:$0xff]  ;;  %v1216_v25 = vld [vmem:[%s1882_s1 + $0x30] sm:$0xff] }
   0x5   :  { %v232_v10 = vpack.c.b16 %v222_v5, %v222_v5  ;;  %v1199_v19 = vld [vmem:[%s1885_s4 + $0x4] sm:$0xf]  ;;  %v1031_v20 = vld [vmem:[%s1885_s4 + $0x8] sm:$0xf0]  ;;  %v1235_v28 = vld [vmem:[%s1884_s3 + $0x38] sm:$0xff] }
   0x6   :  { %v136_v12 = vsel %vm134_vm0, %v120_v7, 0  ;;  %139 = vmatpush.bf16.msra.mxu0 %v1207_v6  ;;  %v341_v17 = vpack.c.b16 %v331_v11, %v331_v11  ;;  %v1224_v21 = vld [vmem:[%s1883_s2 + $0x28] sm:$0xff]  ;;  %v1413_v23 = vor.u32 %v1199_v19, %v1031_v20  ;;  %v1205_v24 = vld [vmem:[%s1881_s0 + $0x20] sm:$0xff]  ;;  %v1204_v29 = vld [vmem:[%s1881_s0 + $0x18] sm:$0xff] }
   0x7   :  { %158 = vmatpush.bf16.msra.mxu2 %v136_v12  ;;  %v243_v13 = vsel %vm134_vm0, %v232_v10, 0  ;;  %355 = vmatpush.bf16.msra.mxu1 %v1225_v8  ;;  %v1227_v26 = vld [vmem:[%s1883_s2 + $0x40] sm:$0xff]  ;;  %v1215_v30 = vld [vmem:[%s1882_s1 + $0x28] sm:$0xff] }
   0x8   :  { %265 = vmatpush.bf16.msra.mxu3 %v243_v13  ;;  %v352_v22 = vsel %vm134_vm0, %v341_v17, 0  ;;  %v1223_v27 = vld [vmem:[%s1883_s2 + $0x20] sm:$0xff] }
   0xa   :  { %140 = vmatpush.bf16.msra.mxu0 %v1206_v16 }
   0xb   :  { %159 = vmatpush.bf16.msra.mxu2 %v1209_v14  ;;  %356 = vmatpush.bf16.msra.mxu1 %v1224_v21 }
   0xc   :  { %266 = vmatpush.bf16.msra.mxu3 %v1218_v15 }
   0xe   :  { %1071 = vmatmul.msk.bf16.vlgmr.msra.gmra.mxu2 %vm130_vm1, %v1413_v23  ;;  %141 = vmatpush.bf16.msra.mxu0 %v1205_v24 }
   0xf   :  { %245 = vmatpush.bf16.msrb.mxu2 %v1217_v18  ;;  %1108 = vmatmul.msk.bf16.vlgmr.msra.gmra.mxu3 %vm130_vm1, %v1413_v23 }
  0x10   :  { %374 = vmatpush.bf16.msrb.mxu3 %v352_v22 }
  0x13   :  { %246 = vmatpush.bf16.msrb.mxu2 %v1216_v25 }
  0x14   :  { %17 = vsyncpa [#allocation4], 0  ;;  %375 = vmatpush.bf16.msrb.mxu3 %v1227_v26  ;;  %357 = vmatpush.bf16.msra.mxu1 %v1223_v27  ;;  %v1222_v31 = vld [vmem:[%s1883_s2 + $0x18] sm:$0xff]  ;;  %v1234_v32 = vld [vmem:[%s1884_s3 + $0x30] sm:$0xff]  ;;  %v1285_v36 = vmov 0   ;;  %vm509_vm2 = vcmask 196608  }
  0x15   :  { %v402_v33 = vld [vmem:[%s1884_s3 + $0x48] sm:$0x7]  ;;  %v493_v34 = vld [vmem:[%s1886_s5] sm:$0xff]  ;;  %142 = vmatpush.bf16.msra.mxu0 %v1204_v29  ;;  %v1203_v35 = vld [vmem:[%s1881_s0 + $0x10] sm:$0xff]  ;;  %1255 = vset.pattern.permute.xlu0 %v1285_v36  ;;  %s1288_s19 = smov 50   ;;  %s1289_s20 = smov 25  }
  0x16   :  { %v1214_v37 = vld [vmem:[%s1882_s1 + $0x20] sm:$0xff]  ;;  %497 = vperm.xlu0 %1255, %v493_v34   ;;  %v1221_v38 = vld [vmem:[%s1883_s2 + $0x10] sm:$0xff]  ;;  %v440_v39 = vunpack.c.l.b16 %v402_v33  ;;  %v1233_v40 = vld [vmem:[%s1884_s3 + $0x28] sm:$0xff]  ;;  %s1290_s21 = smov 97   ;;  %s1291_s22 = smov 47   ;;  %vm517_vm3 = vcmask 401608  }
  0x17   :  { %247 = vmatpush.bf16.msrb.mxu2 %v1215_v30  ;;  %v1202_v41 = vld [vmem:[%s1881_s0 + $0x8] sm:$0xff]  ;;  %v1213_v42 = vld [vmem:[%s1882_s1 + $0x18] sm:$0xff]  ;;  %v1232_v46 = vld [vmem:[%s1884_s3 + $0x20] sm:$0xff]  ;;  %s1293_s23 = smov 100   ;;  %s1294_s24 = smov 125   ;;  %vm525_vm4 = vcmask 606608  }
  0x18   :  { %463 = vmatpush.bf16.msra.mxu3 %v1235_v28  ;;  %358 = vmatpush.bf16.msra.mxu1 %v1222_v31  ;;  %v1220_v43 = vld [vmem:[%s1883_s2 + $0x8] sm:$0xff]  ;;  %v450_v44 = vpack.c.b16 %v440_v39, %v440_v39  ;;  %v1201_v47 = vld [vmem:[%s1881_s0] sm:$0xff]  ;;  %v1212_v50 = vld [vmem:[%s1882_s1 + $0x10] sm:$0xff]  ;;  %s1295_s25 = smov 22   ;;  %s1296_s0 = smov 122   ;;  %vm535_vm5 = vcmask 811608  }
  0x19   :  { %143 = vmatpush.bf16.msra.mxu0 %v1203_v35  ;;  %v494_v45 = vld [vmem:[%s1886_s5 + $0x8] sm:$0xff]  ;;  %v1029_v48 = vld [vmem:[%s1885_s4] sm:$0xf]  ;;  %v1231_v53 = vld [vmem:[%s1884_s3 + $0x18] sm:$0xff]  ;;  %s1292_s5 = smov 75   ;;  %s1297_s26 = smov 19  }
  0x1a   :  { %v1200_v49 = vld [vmem:[%s1885_s4 + $0x4] sm:$0xf0]  ;;  %v1219_v51 = vld [vmem:[%s1883_s2] sm:$0xff]  ;;  %v461_v52 = vsel %vm134_vm0, %v450_v44, 0  ;;  %v1230_v57 = vld [vmem:[%s1884_s3 + $0x10] sm:$0xff]  ;;  %s1298_s4 = smov 44  }
  0x1b   :  { %248 = vmatpush.bf16.msrb.mxu2 %v1214_v37  ;;  %v1030_v54 = vor.u32 %v1200_v49, %v1029_v48  ;;  %v1211_v55 = vld [vmem:[%s1882_s1 + $0x8] sm:$0xff]  ;;  %v1236_v56 = vld [vmem:[%s1884_s3 + $0x40] sm:$0xff]  ;;  %s1299_s27 = smov 69   ;;  %s1300_s2 = smov 119   ;;  %vm556_vm6 = vcmask 1041384   ;;  %vm557_vm7 = vcmask 174082  }
  0x1c   :  { %464 = vmatpush.bf16.msra.mxu3 %v1234_v32  ;;  %359 = vmatpush.bf16.msra.mxu1 %v1221_v38  ;;  %v1210_v58 = vld [vmem:[%s1882_s1] sm:$0xff]  ;;  %v1229_v59 = vld [vmem:[%s1884_s3 + $0x8] sm:$0xff]  ;;  %s1286_s1 = smov 103   ;;  %vm553_vm8 = vcmask 1022976   ;;  %vm543_vm9 = vcmask 1016608   ;;  %vm1576_vm10 = vmor %vm557_vm7, %vm556_vm6  ;;  %vm566_vm11 = vcmask 377008  }
  0x1d   :  { %144 = vmatpush.bf16.msra.mxu0 %v1202_v41  ;;  %v1228_v60 = vld [vmem:[%s1884_s3] sm:$0xff]  ;;  %s1287_s3 = smov 72   ;;  %vm576_vm12 = vcmask 582008   ;;  %vm582_vm13 = vcmask 787008   ;;  %vm589_vm14 = vcmask 992008   ;;  %vm600_vm15 = vcmask 1041360  }
  0x1e   :  { %502 = vperm.xlu0 %1255, %v494_v45   ;;  %vm601_vm0 = vcmask 149506   ;;  %vm620_vm6 = vcmask 557408   ;;  %s1301_s28 = smov 94   ;;  %vm630_vm7 = vcmask 762408  }
  0x1f   :  { %249 = vmatpush.bf16.msrb.mxu2 %v1213_v42  ;;  %1145 = vmatmul.msk.bf16.vlgmr.msrb.gmra.mxu3 %vm130_vm1, %v1413_v23 }
  0x20   :  { %465 = vmatpush.bf16.msra.mxu3 %v1233_v40  ;;  %360 = vmatpush.bf16.msra.mxu1 %v1220_v43 }
  0x21   :  { %145 = vmatpush.bf16.msra.mxu0 %v1201_v47 }
  0x23   :  { %250 = vmatpush.bf16.msrb.mxu2 %v1212_v50 }
  0x24   :  { %466 = vmatpush.bf16.msra.mxu3 %v1232_v46  ;;  %361 = vmatpush.bf16.msra.mxu1 %v1219_v51 }
  0x25   :  { %483 = vmatpush.bf16.msrb.mxu0 %v461_v52 }
  0x26   :  { %146 = vmatmul.bf16.vlgmr.msra.gmra.mxu0 %v1030_v54 }
  0x27   :  { %251 = vmatpush.bf16.msrb.mxu2 %v1211_v55  ;;  %362 = vmatmul.bf16.vlgmr.msra.gmra.mxu1 %v1030_v54 }
  0x28   :  { %467 = vmatpush.bf16.msra.mxu3 %v1231_v53 }
  0x29   :  { %484 = vmatpush.bf16.msrb.mxu0 %v1236_v56 }
  0x2b   :  { %252 = vmatpush.bf16.msrb.mxu2 %v1210_v58 }
  0x2c   :  { %468 = vmatpush.bf16.msra.mxu3 %v1230_v57 }
  0x2e   :  { %253 = vmatmul.bf16.vlgmr.msrb.gmra.mxu2 %v1030_v54 }
  0x30   :  { %469 = vmatpush.bf16.msra.mxu3 %v1229_v59 }
  0x34   :  { %470 = vmatpush.bf16.msra.mxu3 %v1228_v60 }
  0x36   :  { %1182 = vmatmul.msk.bf16.vlgmr.msrb.gmra.mxu0 %vm130_vm1, %v1413_v23  ;;  %vm597_vm1 = vcmask 998400  }
  0x37   :  { %471 = vmatmul.bf16.vlgmr.msra.gmra.mxu3 %v1030_v54 }
  0x88   :  { %v498_v14 = vpop.permute.xlu0 %497 }
  0x90   :  { %v503_v30 = vpop.permute.xlu0 %502 }
  0x91   :  { %v161_v63 = vpop.f32.mrf.mxu2 }
  0x92   :  { %v268_v61 = vpop.f32.mrf.mxu3 }
  0x99   :  { %v163_v2 = vpop.f32.mrf.mxu2 }
  0x9a   :  { %v270_v62 = vpop.f32.mrf.mxu3 }
  0xa2   :  { %v377_v1 = vpop.f32.mrf.mxu3 }
  0xa3   :  { %v147_v0 = vpop.f32.mrf.mxu0 }
  0xa4   :  { %v363_v4 = vpop.f32.mrf.mxu1  ;;  %v162_v7 = vadd.f32 %v161_v63, %v147_v0 }
  0xa5   :  { %v378_v9 = vadd.f32 %v377_v1, %v363_v4 }
  0xaa   :  { %v379_v5 = vpop.f32.mrf.mxu3 }
  0xab   :  { %v149_v3 = vpop.f32.mrf.mxu0 }
  0xac   :  { %v365_v16 = vpop.f32.mrf.mxu1  ;;  %v164_v18 = vadd.f32 %v163_v2, %v149_v3 }
  0xad   :  { %v380_v21 = vadd.f32 %v379_v5, %v365_v16 }
  0xb1   :  { %v254_v6 = vpop.f32.mrf.mxu2 }
  0xb2   :  { %v269_v8 = vadd.f32 %v268_v61, %v254_v6 }
  0xb3   :  { %v486_v11 = vpop.f32.mrf.mxu0 }
  0xb4   :  { %v273_v10 = vmax.f32 %v162_v7, %v269_v8  ;;  %v798_v7 = vld [vmem:[%s1887_s6 + $0xb8] sm:$0xff] }
  0xb6   :  { %v382_v12 = vmax.f32 %v273_v10, %v378_v9 }
  0xb9   :  { %v256_v17 = vpop.f32.mrf.mxu2 }
  0xba   :  { %v472_v13 = vpop.f32.mrf.mxu3  ;;  %v271_v20 = vadd.f32 %v270_v62, %v256_v17 }
  0xbb   :  { %v487_v15 = vadd.f32 %v486_v11, %v472_v13  ;;  %v488_v26 = vpop.f32.mrf.mxu0 }
  0xbc   :  { %v274_v23 = vmax.f32 %v164_v18, %v271_v20 }
  0xbd   :  { %v491_v19 = vmax.f32 %v382_v12, %v487_v15 }
  0xbe   :  { %v383_v25 = vmax.f32 %v274_v23, %v380_v21  ;;  %v777_v21 = vld [vmem:[%s1887_s6 + $0x10] sm:$0xff] }
  0xbf   :  { %v505_v22 = vadd.f32 %v498_v14, %v491_v19 }
  0xc1   :  { %v1520_v24 = vmax.f32 %v505_v22, 0.0 }
  0xc2   :  { %v474_v27 = vpop.f32.mrf.mxu3 }
  0xc3   :  { %519 = vst.sshfl [vmem:[#allocation1] sm:$0xff pattern:$0x73625140] %v1520_v24  ;;  %v489_v28 = vadd.f32 %v488_v26, %v474_v27  ;;  %655 = vrot.lane.b32.xlu1 %v1520_v24, %s1286_s1  ;;  %v512_v31 = vrot.slane %v1520_v24, 7 }
  0xc4   :  { %510 = vst.msk [vmem:[#allocation2] sm:$0x1] %vm509_vm2, %v1520_v24 }
  0xc5   :  { %v492_v29 = vmax.f32 %v383_v25, %v489_v28  ;;  %v1529_v35 = vrot.slane %v512_v31, 2 }
  0xc7   :  { %v506_v32 = vadd.f32 %v503_v30, %v492_v29 }
  0xc9   :  { %v1527_v33 = vmax.f32 %v506_v32, 0.0 }
  0xca   :  { %v521_v34 = vld [vmem:[#allocation1 + $0x1] ss:$4 sm:$0xff] }
  0xcb   :  { %527 = vst.sshfl [vmem:[#allocation1] sm:$0xff pattern:$0x73625140] %v1520_v24  ;;  %579 = vrot.lane.b32.xlu0 %v1527_v33, %s1287_s3  ;;  %522 = vrot.lane.b32.xlu2 %v521_v34, %s1288_s19  ;;  %v584_v36 = vrot.slane %v1527_v33, 7 }
  0xcc   :  { %514 = vrot.lane.b32.xlu1 %v1529_v35, %s1289_s20 }
  0xcd   :  { %v585_v37 = vrot.slane %v584_v36, 2 }
  0xd2   :  { %v529_v38 = vld [vmem:[#allocation1 + $0x1] ss:$4 sm:$0xff] }
  0xd3   :  { %537 = vst.sshfl [vmem:[#allocation1] sm:$0xff pattern:$0x73625140] %v1520_v24  ;;  %716 = vrot.lane.b32.xlu0 %v585_v37, %s1287_s3  ;;  %586 = vrot.lane.b32.xlu2 %v585_v37, %s1290_s21  ;;  %v1183_v39 = vrot.slane %v529_v38, 9  ;;  %s1302_s3 = smov [#allocation3]  }
  0xd4   :  { %712 = vrot.lane.b32.xlu1 %v1527_v33, %s1291_s22 }
  0xda   :  { %v539_v40 = vld [vmem:[#allocation1 + $0x2] ss:$4 sm:$0xff] }
  0xdb   :  { %545 = vst.sshfl [vmem:[#allocation1] sm:$0xff pattern:$0x73625140] %v1520_v24  ;;  %532 = vrot.lane.b32.xlu2 %v1183_v39, %s1292_s5 }
  0xdc   :  { %540 = vrot.lane.b32.xlu1 %v539_v40, %s1293_s23 }
  0xe2   :  { %v547_v41 = vld [vmem:[#allocation1 + $0x2] ss:$4 sm:$0xff] }
  0xe3   :  { %v1184_v42 = vrot.slane %v547_v41, 9  ;;  %560 = vst.sshfl [vmem:[#allocation1] sm:$0xff pattern:$0x73625140] %v1520_v24 }
  0xe5   :  { %550 = vrot.lane.b32.xlu2 %v1184_v42, %s1294_s24 }
  0xea   :  { %v562_v43 = vld [vmem:[#allocation1 + $0x3] ss:$4 sm:$0xff] }
  0xeb   :  { %563 = vrot.lane.b32.xlu0 %v562_v43, %s1295_s25  ;;  %568 = vst.sshfl [vmem:[#allocation1] sm:$0xff pattern:$0x73625140] %v1520_v24 }
  0xf2   :  { %v570_v44 = vld [vmem:[#allocation1 + $0x3] ss:$4 sm:$0xff] }
  0xf3   :  { %v1185_v45 = vrot.slane %v570_v44, 9  ;;  %591 = vst.sshfl [vmem:[#allocation1] sm:$0xff pattern:$0x73625140] %v1527_v33 }
  0xf5   :  { %573 = vrot.lane.b32.xlu2 %v1185_v45, %s1291_s22  ;;  %v790_v45 = vld [vmem:[%s1887_s6 + $0x78] sm:$0xff] }
  0xf6   :  { %841 = vmatpush.msra.mxu2 %v790_v45 }
  0xfa   :  { %v593_v46 = vld [vmem:[#allocation1 + $0x1] ss:$4 sm:$0xff] }
  0xfb   :  { %594 = vrot.lane.b32.xlu0 %v593_v46, %s1296_s0  ;;  %604 = vst.sshfl [vmem:[#allocation1] sm:$0xff pattern:$0x73625140] %v1527_v33  ;;  %v806_v46 = vld [vmem:[%s1887_s6 + $0xf8] sm:$0xff] }
  0xfc   :  { %861 = vmatpush.msrb.mxu1 %v806_v46 }
 0x102   :  { %v606_v47 = vld [vmem:[#allocation1 + $0x1] ss:$4 sm:$0xff] }
 0x103   :  { %v1186_v48 = vrot.slane %v606_v47, 9  ;;  %614 = vst.sshfl [vmem:[#allocation1] sm:$0xff pattern:$0x73625140] %v1527_v33  ;;  %v822_v47 = vld [vmem:[%s1887_s6 + $0x178] sm:$0xff] }
 0x104   :  { %881 = vmatpush.msra.mxu0 %v822_v47 }
 0x105   :  { %609 = vrot.lane.b32.xlu1 %v1186_v48, %s1297_s26 }
 0x10a   :  { %v616_v49 = vld [vmem:[#allocation1 + $0x2] ss:$4 sm:$0xff] }
 0x10b   :  { %617 = vrot.lane.b32.xlu0 %v616_v49, %s1298_s4  ;;  %622 = vst.sshfl [vmem:[#allocation1] sm:$0xff pattern:$0x73625140] %v1527_v33  ;;  %v789_v49 = vld [vmem:[%s1887_s6 + $0x70] sm:$0xff] }
 0x10c   :  { %842 = vmatpush.msra.mxu2 %v789_v49 }
 0x112   :  { %v624_v50 = vld [vmem:[#allocation1 + $0x2] ss:$4 sm:$0xff] }
 0x113   :  { %v1187_v51 = vrot.slane %v624_v50, 9  ;;  %632 = vst.sshfl [vmem:[#allocation1] sm:$0xff pattern:$0x73625140] %v1527_v33  ;;  %v805_v50 = vld [vmem:[%s1887_s6 + $0xf0] sm:$0xff] }
 0x114   :  { %862 = vmatpush.msrb.mxu1 %v805_v50 }
 0x115   :  { %627 = vrot.lane.b32.xlu1 %v1187_v51, %s1299_s27  ;;  %v821_v51 = vld [vmem:[%s1887_s6 + $0x170] sm:$0xff] }
 0x116   :  { %882 = vmatpush.msra.mxu0 %v821_v51  ;;  %v930_v51 = vld [vmem:[%s1889_s8 + $0x40] sm:$0xff] }
 0x11a   :  { %v1556_v52 = vld [vmem:[#allocation1 + $0x3] ss:$4 sm:$0xff] }
 0x11b   :  { %640 = vst.sshfl [vmem:[#allocation1] sm:$0xff pattern:$0x73625140] %v1527_v33 }
 0x122   :  { %v642_v53 = vld [vmem:[#allocation1 + $0x3] ss:$4 sm:$0xff] }
 0x123   :  { %v1188_v54 = vrot.slane %v642_v53, 9  ;;  %661 = vst.sshfl [vmem:[#allocation1] sm:$0xff pattern:$0x73625140] %v1520_v24  ;;  %v804_v53 = vld [vmem:[%s1887_s6 + $0xe8] sm:$0xff] }
 0x124   :  { %863 = vmatpush.msrb.mxu1 %v804_v53  ;;  %v928_v53 = vld [vmem:[%s1889_s8 + $0x30] sm:$0xff] }
 0x125   :  { %645 = vrot.lane.b32.xlu1 %v1188_v54, %s1300_s2  ;;  %v523_v56 = vpop.permute.xlu2 %522  ;;  %v820_v54 = vld [vmem:[%s1887_s6 + $0x168] sm:$0xff] }
 0x126   :  { %883 = vmatpush.msra.mxu0 %v820_v54  ;;  %v927_v54 = vld [vmem:[%s1889_s8 + $0x28] sm:$0xff] }
 0x12a   :  { %v663_v55 = vld [vmem:[#allocation1 + $0x1] ss:$4 sm:$0xff] }
 0x12b   :  { %664 = vrot.lane.b32.xlu0 %v663_v55, %s1289_s20  ;;  %668 = vst.sshfl [vmem:[#allocation1] sm:$0xff pattern:$0x73625140] %v1520_v24  ;;  %v787_v55 = vld [vmem:[%s1887_s6 + $0x60] sm:$0xff] }
 0x12d   :  { %v587_v60 = vpop.permute.xlu2 %586 }
 0x132   :  { %v670_v57 = vld [vmem:[#allocation1 + $0x1] ss:$4 sm:$0xff] }
 0x133   :  { %v1189_v58 = vrot.slane %v670_v57, 9  ;;  %677 = vst.sshfl [vmem:[#allocation1] sm:$0xff pattern:$0x73625140] %v1520_v24  ;;  %v819_v57 = vld [vmem:[%s1887_s6 + $0x160] sm:$0xff] }
 0x134   :  { %884 = vmatpush.msra.mxu0 %v819_v57  ;;  %v924_v57 = vld [vmem:[%s1889_s8 + $0x10] sm:$0xff] }
 0x135   :  { %v656_v59 = vpop.permute.xlu1 %655  ;;  %673 = vrot.lane.b32.xlu0 %v1189_v58, %s1288_s19  ;;  %v533_v63 = vpop.permute.xlu2 %532  ;;  %v786_v58 = vld [vmem:[%s1887_s6 + $0x58] sm:$0xff]  ;;  %s1016_s19 = sshll.u32 %s1302_s3, 4  ;;  %s1017_s19 = int_to_ptr.vmem [resolvable:$true] %s1016_s19 }
 0x136   :  { %658 = vst.msk [vmem:[#allocation2 + $0x1] sm:$0x1] %vm509_vm2, %v656_v59  ;;  %vm1597_vm2 = vmor %vm601_vm0, %vm600_vm15  ;;  %v802_v59 = vld [vmem:[%s1887_s6 + $0xd8] sm:$0xff]  ;;  %vm985_vm15 = vcmask 1043456   ;;  %vm941_vm0 = vcmask 982016  }
 0x137   :  { %660 = vst.msk [vmem:[#allocation2 + $0x1] sm:$0x1] %vm517_vm3, %v1529_v35 }
 0x13a   :  { %v679_v61 = vld [vmem:[#allocation1 + $0x2] ss:$4 sm:$0xff] }
 0x13b   :  { %680 = vrot.lane.b32.xlu2 %v679_v61, %s1292_s5  ;;  %684 = vst.sshfl [vmem:[#allocation1] sm:$0xff pattern:$0x73625140] %v1520_v24  ;;  %v785_v61 = vld [vmem:[%s1887_s6 + $0x50] sm:$0xff] }
 0x13d   :  { %v580_v5 = vpop.permute.xlu0 %579 }
 0x13e   :  { %v515_v62 = vpop.permute.xlu1 %514 }
 0x13f   :  { %518 = vst.msk [vmem:[#allocation2] sm:$0x1] %vm517_vm3, %v515_v62  ;;  %v551_v3 = vpop.permute.xlu2 %550  ;;  %vm612_vm3 = vcmask 352408   ;;  %v801_v62 = vld [vmem:[%s1887_s6 + $0xd0] sm:$0xff] }
 0x140   :  { %526 = vst.msk [vmem:[#allocation2] sm:$0x1] %vm525_vm4, %v523_v56  ;;  %v552_v6 = vrot.slane %v551_v3, 6  ;;  %v803_v56 = vld [vmem:[%s1887_s6 + $0xe0] sm:$0xff] }
 0x141   :  { %536 = vst.msk [vmem:[#allocation2] sm:$0x1] %vm535_vm5, %v533_v63  ;;  %864 = vmatpush.msrb.mxu1 %v803_v56  ;;  %v817_v63 = vld [vmem:[%s1887_s6 + $0x150] sm:$0xff]  ;;  %v925_v56 = vld [vmem:[%s1889_s8 + $0x18] sm:$0xff] }
 0x142   :  { %v686_v0 = vld [vmem:[#allocation1 + $0x2] ss:$4 sm:$0xff]  ;;  %v554_v9 = vsel %vm553_vm8, %v552_v6, %v551_v3  ;;  %vm692_vm8 = vcmask 818176  }
 0x143   :  { %v1190_v1 = vrot.slane %v686_v0, 9  ;;  %696 = vst.sshfl [vmem:[#allocation1] sm:$0xff pattern:$0x73625140] %v1520_v24  ;;  %865 = vmatpush.msrb.mxu1 %v802_v59  ;;  %v784_v0 = vld [vmem:[%s1887_s6 + $0x48] sm:$0xff]  ;;  %v783_v3 = vld [vmem:[%s1887_s6 + $0x40] sm:$0xff] }
 0x144   :  { %v782_v6 = vld [vmem:[%s1887_s6 + $0x38] sm:$0xff]  ;;  %v922_v59 = vld [vmem:[%s1889_s8] sm:$0xff] }
 0x145   :  { %689 = vrot.lane.b32.xlu1 %v1190_v1, %s1293_s23  ;;  %v1584_v12 = vpop.permute.xlu0 %716  ;;  %v800_v1 = vld [vmem:[%s1887_s6 + $0xc8] sm:$0xff]  ;;  %866 = vmatpush.msrb.mxu1 %v801_v62  ;;  %v974_v62 = vld [vmem:[%s1891_s10 + $0x40] sm:$0xff] }
 0x146   :  { %v1572_v2 = vpop.permute.xlu1 %712 }
 0x147   :  { %867 = vmatpush.msrb.mxu1 %v800_v1  ;;  %v971_v1 = vld [vmem:[%s1891_s10 + $0x28] sm:$0xff] }
 0x14a   :  { %v698_v4 = vld [vmem:[#allocation1 + $0x3] ss:$4 sm:$0xff] }
 0x14b   :  { %703 = vst.sshfl [vmem:[#allocation1] sm:$0xff pattern:$0x73625140] %v1520_v24 }
 0x14d   :  { %699 = vrot.lane.b32.xlu1 %v698_v4, %s1294_s24  ;;  %v799_v4 = vld [vmem:[%s1887_s6 + $0xc0] sm:$0xff] }
 0x14e   :  { %v541_v8 = vpop.permute.xlu1 %540  ;;  %868 = vmatpush.msrb.mxu1 %v799_v4  ;;  %v1256_v4 = vld [vmem:[%s1888_s7] ss:$0 sm:$0xff] }
 0x14f   :  { %544 = vst.msk [vmem:[#allocation2] sm:$0x1] %vm543_vm9, %v541_v8  ;;  %v574_v15 = vpop.permute.xlu2 %573  ;;  %v814_v8 = vld [vmem:[%s1887_s6 + $0x138] sm:$0xff] }
 0x150   :  { %559 = vst.msk [vmem:[#allocation2] sm:$0x5] %vm1576_vm10, %v554_v9  ;;  %869 = vmatpush.msrb.mxu1 %v798_v7  ;;  %v781_v9 = vld [vmem:[%s1887_s6 + $0x30] sm:$0xff] }
 0x152   :  { %v705_v10 = vld [vmem:[#allocation1 + $0x3] ss:$4 sm:$0xff] }
 0x153   :  { %v1191_v11 = vrot.slane %v705_v10, 9  ;;  %720 = vst.sshfl [vmem:[#allocation1] sm:$0xff pattern:$0x73625140] %v1527_v33  ;;  %v797_v10 = vld [vmem:[%s1887_s6 + $0xb0] sm:$0xff] }
 0x154   :  { %870 = vmatpush.msrb.mxu1 %v797_v10 }
 0x155   :  { %708 = vrot.lane.b32.xlu1 %v1191_v11, %s1295_s25  ;;  %v813_v11 = vld [vmem:[%s1887_s6 + $0x130] sm:$0xff] }
 0x15a   :  { %v722_v13 = vld [vmem:[#allocation1 + $0x1] ss:$4 sm:$0xff] }
 0x15b   :  { %723 = vrot.lane.b32.xlu2 %v722_v13, %s1290_s21  ;;  %730 = vst.sshfl [vmem:[#allocation1] sm:$0xff pattern:$0x73625140] %v1527_v33  ;;  %v796_v13 = vld [vmem:[%s1887_s6 + $0xa8] sm:$0xff] }
 0x15c   :  { %871 = vmatpush.msrb.mxu1 %v796_v13 }
 0x15d   :  { %v564_v14 = vpop.permute.xlu0 %563 }
 0x15e   :  { %567 = vst.msk [vmem:[#allocation2 + $0x2] sm:$0x1] %vm566_vm11, %v564_v14  ;;  %v812_v14 = vld [vmem:[%s1887_s6 + $0x128] sm:$0xff] }
 0x15f   :  { %577 = vst.msk [vmem:[#allocation2 + $0x2] sm:$0x1] %vm576_vm12, %v574_v15  ;;  %v779_v15 = vld [vmem:[%s1887_s6 + $0x20] sm:$0xff] }
 0x160   :  { %583 = vst.msk [vmem:[#allocation2 + $0x2] sm:$0x1] %vm582_vm13, %v580_v5  ;;  %v815_v5 = vld [vmem:[%s1887_s6 + $0x140] sm:$0xff] }
 0x161   :  { %590 = vst.msk [vmem:[#allocation2 + $0x2] sm:$0x1] %vm589_vm14, %v587_v60  ;;  %v818_v60 = vld [vmem:[%s1887_s6 + $0x158] sm:$0xff] }
 0x162   :  { %v732_v16 = vld [vmem:[#allocation1 + $0x1] ss:$4 sm:$0xff]  ;;  %885 = vmatpush.msra.mxu0 %v818_v60 }
 0x163   :  { %v1192_v17 = vrot.slane %v732_v16, 9  ;;  %739 = vst.sshfl [vmem:[#allocation1] sm:$0xff pattern:$0x73625140] %v1527_v33  ;;  %v795_v16 = vld [vmem:[%s1887_s6 + $0xa0] sm:$0xff] }
 0x164   :  { %886 = vmatpush.msra.mxu0 %v817_v63  ;;  %872 = vmatpush.msrb.mxu1 %v795_v16  ;;  %v976_v60 = vld [vmem:[%s1891_s10 + $0x50] sm:$0xf]  ;;  %v973_v63 = vld [vmem:[%s1891_s10 + $0x38] sm:$0xff]  ;;  %v966_v16 = vld [vmem:[%s1891_s10] sm:$0xff] }
 0x165   :  { %735 = vrot.lane.b32.xlu2 %v1192_v17, %s1296_s0  ;;  %v811_v17 = vld [vmem:[%s1887_s6 + $0x120] sm:$0xff] }
 0x16a   :  { %v741_v18 = vld [vmem:[#allocation1 + $0x2] ss:$4 sm:$0xff] }
 0x16b   :  { %746 = vst.sshfl [vmem:[#allocation1] sm:$0xff pattern:$0x73625140] %v1527_v33 }
 0x16d   :  { %v595_v19 = vpop.permute.xlu0 %594  ;;  %742 = vrot.lane.b32.xlu2 %v741_v18, %s1297_s26  ;;  %v778_v18 = vld [vmem:[%s1887_s6 + $0x18] sm:$0xff] }
 0x16e   :  { %v596_v20 = vrot.slane %v595_v19, 6 }
 0x170   :  { %v598_v22 = vsel %vm597_vm1, %v596_v20, %v595_v19  ;;  %v794_v19 = vld [vmem:[%s1887_s6 + $0x98] sm:$0xff]  ;;  %vm981_vm1 = vcmask 687104  }
 0x171   :  { %603 = vst.msk [vmem:[#allocation2 + $0x2] sm:$0x5] %vm1597_vm2, %v598_v22  ;;  %v810_v20 = vld [vmem:[%s1887_s6 + $0x118] sm:$0xff]  ;;  %v793_v22 = vld [vmem:[%s1887_s6 + $0x90] sm:$0xff]  ;;  %873 = vmatpush.msrb.mxu1 %v794_v19 }
 0x172   :  { %v748_v23 = vld [vmem:[#allocation1 + $0x2] ss:$4 sm:$0xff] }
 0x173   :  { %v1193_v24 = vrot.slane %v748_v23, 9  ;;  %755 = vst.sshfl [vmem:[#allocation1] sm:$0xff pattern:$0x73625140] %v1527_v33  ;;  %v809_v23 = vld [vmem:[%s1887_s6 + $0x110] sm:$0xff]  ;;  %874 = vmatpush.msrb.mxu1 %v793_v22 }
 0x175   :  { %751 = vrot.lane.b32.xlu2 %v1193_v24, %s1298_s4  ;;  %v776_v24 = vld [vmem:[%s1887_s6 + $0x8] sm:$0xff] }
 0x177   :  { %v610_v25 = vpop.permute.xlu1 %609 }
 0x178   :  { %613 = vst.msk [vmem:[#allocation2 + $0x4] sm:$0x1] %vm612_vm3, %v610_v25  ;;  %v792_v25 = vld [vmem:[%s1887_s6 + $0x88] sm:$0xff] }
 0x179   :  { %875 = vmatpush.msrb.mxu1 %v792_v25 }
 0x17a   :  { %v757_v26 = vld [vmem:[#allocation1 + $0x3] ss:$4 sm:$0xff] }
 0x17b   :  { %758 = vrot.lane.b32.xlu1 %v757_v26, %s1299_s27  ;;  %762 = vst.sshfl [vmem:[#allocation1] sm:$0xff pattern:$0x73625140] %v1527_v33 }
 0x17d   :  { %v618_v27 = vpop.permute.xlu0 %617 }
 0x17e   :  { %621 = vst.msk [vmem:[#allocation2 + $0x4] sm:$0x1] %vm620_vm6, %v618_v27  ;;  %v808_v27 = vld [vmem:[%s1887_s6 + $0x108] sm:$0xff] }
 0x182   :  { %v764_v28 = vld [vmem:[#allocation1 + $0x3] ss:$4 sm:$0xff] }
 0x183   :  { %v1194_v29 = vrot.slane %v764_v28, 9  ;;  %v775_v28 = vld [vmem:[%s1887_s6] sm:$0xff] }
 0x185   :  { %767 = vrot.lane.b32.xlu0 %v1194_v29, %s1301_s28  ;;  %v791_v29 = vld [vmem:[%s1887_s6 + $0x80] sm:$0xff] }
 0x186   :  { %876 = vmatpush.msrb.mxu1 %v791_v29 }
 0x187   :  { %v628_v30 = vpop.permute.xlu1 %627 }
 0x188   :  { %631 = vst.msk [vmem:[#allocation2 + $0x4] sm:$0x1] %vm630_vm7, %v628_v30  ;;  %v807_v30 = vld [vmem:[%s1887_s6 + $0x100] sm:$0xff]  ;;  %1197 = vmatpush.msk.msra.mxu1 %vm985_vm15, %v976_v60 }
 0x18d   :  { %635 = vrot.lane.b32.xlu0 %v1556_v52, %s1301_s28  ;;  %v788_v52 = vld [vmem:[%s1887_s6 + $0x68] sm:$0xff] }
 0x18e   :  { %843 = vmatpush.msra.mxu2 %v788_v52  ;;  %v929_v52 = vld [vmem:[%s1889_s8 + $0x38] sm:$0xff] }
 0x190   :  { %844 = vmatpush.msra.mxu2 %v787_v55  ;;  %v926_v55 = vld [vmem:[%s1889_s8 + $0x20] sm:$0xff] }
 0x192   :  { %845 = vmatpush.msra.mxu2 %v786_v58  ;;  %v923_v58 = vld [vmem:[%s1889_s8 + $0x8] sm:$0xff] }
 0x194   :  { %846 = vmatpush.msra.mxu2 %v785_v61  ;;  %v975_v61 = vld [vmem:[%s1891_s10 + $0x48] sm:$0xff] }
 0x195   :  { %v681_v34 = vpop.permute.xlu2 %680  ;;  %995 = vmatpush.msra.mxu1 %v975_v61 }
 0x196   :  { %847 = vmatpush.msra.mxu2 %v784_v0  ;;  %v972_v0 = vld [vmem:[%s1891_s10 + $0x30] sm:$0xff] }
 0x197   :  { %v1614_v33 = vpop.permute.xlu1 %645  ;;  %996 = vmatpush.msra.mxu1 %v974_v62 }
 0x198   :  { %848 = vmatpush.msra.mxu2 %v783_v3  ;;  %v969_v3 = vld [vmem:[%s1891_s10 + $0x18] sm:$0xff] }
 0x199   :  { %997 = vmatpush.msra.mxu1 %v973_v63 }
 0x19a   :  { %849 = vmatpush.msra.mxu2 %v782_v6 }
 0x19b   :  { %998 = vmatpush.msra.mxu1 %v972_v0 }
 0x19c   :  { %850 = vmatpush.msra.mxu2 %v781_v9 }
 0x19d   :  { %v665_v31 = vpop.permute.xlu0 %664  ;;  %999 = vmatpush.msra.mxu1 %v971_v1 }
 0x19e   :  { %667 = vst.msk [vmem:[#allocation2 + $0x1] sm:$0x1] %vm525_vm4, %v665_v31  ;;  %vm726_vm4 = vcmask 793600   ;;  %v824_v31 = vld [vmem:[%s1887_s6 + $0x188] sm:$0xff] }
 0x1a7   :  { %v674_v32 = vpop.permute.xlu0 %673 }
 0x1a8   :  { %676 = vst.msk [vmem:[#allocation2 + $0x1] sm:$0x1] %vm535_vm5, %v674_v32  ;;  %vm638_vm5 = vcmask 967408   ;;  %v823_v32 = vld [vmem:[%s1887_s6 + $0x180] sm:$0xff] }
 0x1a9   :  { %683 = vst.msk [vmem:[#allocation2 + $0x1] sm:$0x1] %vm543_vm9, %v681_v34  ;;  %vm651_vm9 = vcmask 1041336  }
 0x1b5   :  { %v724_v35 = vpop.permute.xlu2 %723 }
 0x1b6   :  { %v725_v41 = vrot.slane %v724_v35, 6 }
 0x1b7   :  { %v690_v36 = vpop.permute.xlu1 %689 }
 0x1b8   :  { %v691_v37 = vrot.slane %v690_v36, 6  ;;  %v727_v44 = vsel %vm726_vm4, %v725_v41, %v724_v35  ;;  %v647_v41 = vrot.slane %v1614_v33, 6 }
 0x1ba   :  { %v693_v38 = vsel %vm692_vm8, %v691_v37, %v690_v36  ;;  %v936_v37 = vld [vmem:[%s1889_s8 + $0x70] sm:$0xff] }
 0x1bb   :  { %695 = vst.msk [vmem:[#allocation2 + $0x1] sm:$0x5] %vm1576_vm10, %v693_v38  ;;  %vm652_vm10 = vcmask 124930   ;;  %v935_v38 = vld [vmem:[%s1889_s8 + $0x68] sm:$0xff]  ;;  %946 = vmatpush.msrb.mxu3 %v936_v37 }
 0x1bd   :  { %947 = vmatpush.msrb.mxu3 %v935_v38 }
 0x1bf   :  { %v736_v39 = vpop.permute.xlu2 %735  ;;  %v700_v40 = vpop.permute.xlu1 %699 }
 0x1c0   :  { %702 = vst.msk [vmem:[#allocation2 + $0x3] sm:$0x1] %vm566_vm11, %v700_v40  ;;  %vm770_vm11 = vcmask 769024   ;;  %v934_v40 = vld [vmem:[%s1889_s8 + $0x60] sm:$0xff] }
 0x1c1   :  { %948 = vmatpush.msrb.mxu3 %v934_v40 }
 0x1c7   :  { %v743_v42 = vpop.permute.xlu2 %742  ;;  %v709_v43 = vpop.permute.xlu1 %708 }
 0x1c8   :  { %711 = vst.msk [vmem:[#allocation2 + $0x3] sm:$0x1] %vm576_vm12, %v709_v43  ;;  %vm1780_vm12 = vmor %vm652_vm10, %vm651_vm9 }
 0x1c9   :  { %715 = vst.msk [vmem:[#allocation2 + $0x3] sm:$0x1] %vm582_vm13, %v1572_v2  ;;  %v816_v2 = vld [vmem:[%s1887_s6 + $0x148] sm:$0xff]  ;;  %vm648_vm13 = vcmask 973824  }
 0x1ca   :  { %719 = vst.msk [vmem:[#allocation2 + $0x3] sm:$0x1] %vm589_vm14, %v1584_v12  ;;  %887 = vmatpush.msra.mxu0 %v816_v2  ;;  %v780_v12 = vld [vmem:[%s1887_s6 + $0x28] sm:$0xff]  ;;  %v649_v45 = vsel %vm648_vm13, %v647_v41, %v1614_v33  ;;  %vm838_vm14 = vcmask 130048   ;;  %v970_v2 = vld [vmem:[%s1891_s10 + $0x20] sm:$0xff] }
 0x1cb   :  { %729 = vst.msk [vmem:[#allocation2 + $0x3] sm:$0x5] %vm1597_vm2, %v727_v44  ;;  %851 = vmatpush.msra.mxu2 %v780_v12  ;;  %v932_v44 = vld [vmem:[%s1889_s8 + $0x50] sm:$0xff]  ;;  %v931_v33 = vld [vmem:[%s1889_s8 + $0x48] sm:$0xff]  ;;  %1000 = vmatpush.msra.mxu1 %v970_v2  ;;  %vm1009_vm2 = vcmask 74752  }
 0x1cc   :  { %738 = vst.msk [vmem:[#allocation2 + $0x5] sm:$0x1] %vm612_vm3, %v736_v39  ;;  %888 = vmatpush.msra.mxu0 %v815_v5 }
 0x1cd   :  { %745 = vst.msk [vmem:[#allocation2 + $0x5] sm:$0x1] %vm620_vm6, %v743_v42  ;;  %852 = vmatpush.msra.mxu2 %v779_v15  ;;  %v933_v42 = vld [vmem:[%s1889_s8 + $0x58] sm:$0xff]  ;;  %1001 = vmatpush.msra.mxu1 %v969_v3  ;;  %v967_v15 = vld [vmem:[%s1891_s10 + $0x8] sm:$0xff] }
 0x1ce   :  { %889 = vmatpush.msra.mxu0 %v814_v8  ;;  %949 = vmatpush.msrb.mxu3 %v933_v42 }
 0x1cf   :  { %v752_v48 = vpop.permute.xlu2 %751  ;;  %853 = vmatpush.msra.mxu2 %v778_v18 }
 0x1d0   :  { %754 = vst.msk [vmem:[#allocation2 + $0x5] sm:$0x1] %vm630_vm7, %v752_v48  ;;  %890 = vmatpush.msra.mxu0 %v813_v11  ;;  %950 = vmatpush.msrb.mxu3 %v932_v44 }
 0x1d1   :  { %854 = vmatpush.msra.mxu2 %v777_v21  ;;  %v1258_v21 = vld [vmem:[%s1892_s11] ss:$0 sm:$0xff] }
 0x1d2   :  { %891 = vmatpush.msra.mxu0 %v812_v14  ;;  %951 = vmatpush.msrb.mxu3 %v931_v33  ;;  %v968_v14 = vld [vmem:[%s1891_s10 + $0x10] sm:$0xff]  ;;  %s1018_s10 = sshll.u32 %s1893_s12, 4  ;;  %s1019_s10 = int_to_ptr.hbm [resolvable:$true] %s1018_s10 }
 0x1d3   :  { %855 = vmatpush.msra.mxu2 %v776_v24  ;;  %1002 = vmatpush.msra.mxu1 %v968_v14 }
 0x1d4   :  { %892 = vmatpush.msra.mxu0 %v811_v17  ;;  %952 = vmatpush.msrb.mxu3 %v930_v51  ;;  %v1257_v17 = vld [vmem:[%s1890_s9] ss:$0 sm:$0xff] }
 0x1d5   :  { %856 = vmatpush.msra.mxu2 %v775_v28  ;;  %1003 = vmatpush.msra.mxu1 %v967_v15 }
 0x1d6   :  { %893 = vmatpush.msra.mxu0 %v810_v20  ;;  %953 = vmatpush.msrb.mxu3 %v929_v52 }
 0x1d7   :  { %915 = vmatpush.msrb.mxu2 %v824_v31  ;;  %1004 = vmatpush.msra.mxu1 %v966_v16 }
 0x1d8   :  { %894 = vmatpush.msra.mxu0 %v809_v23  ;;  %954 = vmatpush.msrb.mxu3 %v928_v53 }
 0x1d9   :  { %916 = vmatpush.msrb.mxu2 %v823_v32 }
 0x1da   :  { %895 = vmatpush.msra.mxu0 %v808_v27  ;;  %955 = vmatpush.msrb.mxu3 %v927_v54 }
 0x1dc   :  { %896 = vmatpush.msra.mxu0 %v807_v30  ;;  %956 = vmatpush.msrb.mxu3 %v926_v55 }
 0x1de   :  { %957 = vmatpush.msrb.mxu3 %v925_v56 }
 0x1e0   :  { %958 = vmatpush.msrb.mxu3 %v924_v57 }
 0x1e2   :  { %959 = vmatpush.msrb.mxu3 %v923_v58 }
 0x1e4   :  { %960 = vmatpush.msrb.mxu3 %v922_v59 }
 0x1ed   :  { %v759_v26 = vpop.permute.xlu1 %758 }
 0x1ee   :  { %761 = vst.msk [vmem:[#allocation2 + $0x5] sm:$0x1] %vm638_vm5, %v759_v26 }
 0x1f7   :  { %v768_v34 = vpop.permute.xlu0 %767 }
 0x1f8   :  { %v769_v36 = vrot.slane %v768_v34, 6 }
 0x1fa   :  { %v771_v39 = vsel %vm770_vm11, %v769_v36, %v768_v34 }
 0x1fb   :  { %773 = vst.msk [vmem:[#allocation2 + $0x5] sm:$0x5] %vm1780_vm12, %v771_v39 }
 0x1ff   :  { %v636_v43 = vpop.permute.xlu0 %635 }
 0x200   :  { %639 = vst.msk [vmem:[#allocation2 + $0x4] sm:$0x1] %vm638_vm5, %v636_v43 }
 0x201   :  { %654 = vst.msk [vmem:[#allocation2 + $0x4] sm:$0x5] %vm1780_vm12, %v649_v45 }
 0x208   :  { %v774_v46 = vld [vmem:[#allocation2] sm:$0xff] }
 0x209   :  { %830 = vst [vmem:[#allocation1] ss:$4 sm:$0xff] %v774_v46 }
 0x210   :  { %v831_v47 = vld.sshfl [vmem:[#allocation1] sm:$0xff pattern:$0x73625140]  ;;  %v832_v48 = vld.sshfl [vmem:[#allocation1 + $0x8] sm:$0xff pattern:$0x73625140] }
 0x211   :  { %857 = vmatmul.f32.vlgmr.msra.gmra.mxu2 %v831_v47  ;;  %877 = vmatmul.f32.vlgmr.msrb.gmra.mxu1 %v832_v48  ;;  %v833_v49 = vld.sshfl [vmem:[#allocation1 + $0x10] sm:$0xff pattern:$0x73625140]  ;;  %v834_v50 = vld.sshfl [vmem:[#allocation1 + $0x18] sm:$0xff pattern:$0x73625140] }
 0x212   :  { %897 = vmatmul.f32.vlgmr.msra.gmra.mxu0 %v833_v49 }
 0x219   :  { %1195 = vmatmul.msk.f32.vlgmr.msrb.gmra.mxu2 %vm838_vm14, %v834_v50 }
 0x28e   :  { %v878_v7 = vpop.f32.mrf.mxu1 }
 0x28f   :  { %v898_v9 = vpop.f32.mrf.mxu0 }
 0x294   :  { %v858_v5 = vpop.f32.mrf.mxu2 }
 0x295   :  { %v859_v6 = vadd.f32 %v1256_v4, %v858_v5 }
 0x297   :  { %v879_v8 = vadd.f32 %v878_v7, %v859_v6 }
 0x299   :  { %v899_v10 = vadd.f32 %v898_v9, %v879_v8 }
 0x29c   :  { %v918_v11 = vpop.f32.mrf.mxu2 }
 0x29d   :  { %v919_v12 = vadd.f32 %v918_v11, %v899_v10 }
 0x29f   :  { %v921_v13 = vmax.f32 %v919_v12, 0.0 }
 0x2a1   :  { %1196 = vmatmul.msk.f32.vlgmr.msrb.gmra.mxu3 %vm941_vm0, %v921_v13 }
 0x324   :  { %v962_v18 = vpop.f32.mrf.mxu3 }
 0x325   :  { %v963_v19 = vadd.f32 %v1257_v17, %v962_v18 }
 0x327   :  { %v965_v20 = vmax.f32 %v963_v19, 0.0 }
 0x329   :  { %1198 = vmatmul.msk.f32.vlgmr.msra.gmra.mxu1 %vm981_vm1, %v965_v20 }
 0x3a6   :  { %v1006_v22 = vpop.f32.mrf.mxu1 }
 0x3a7   :  { %v1007_v23 = vadd.f32 %v1258_v21, %v1006_v22 }
 0x3a9   :  { %1010 = vst.msk [vmem:[#allocation3] sm:$0x3] %vm1009_vm2, %v1007_v23 }
 0x3aa   :  { %1021 = dma.vmem_to_hbm [thread:$0]  %s1017_s19, 32, %s1019_s10, [#allocation4]  }
 0x3ab   :  { %1283 = dma.done.wait [#allocation4], 32  }
 0x3ac   :  { %1284 = vsyncadd [#allocation4], 4294967264 }
 0x3ad   :  { %1026 = vsyncpa [#allocation4], 1 }

</bundles_post_ra>
